<compile_context>
chip_gen: v5e
topology: v5e:2x2
jax: 0.10.0
libtpu: 0.0.40
codegen_flags: <defaults>
</compile_context>

<pallas_src>
import functools

import jax
import jax.numpy as jnp
from jax.experimental import pallas as pl
from jax.experimental.pallas import tpu as pltpu

SUBLANE = 8  # f32 sublane count; batch block size


# ----------------------------------------------------------------------------
# Fused Pallas kernel: 2-layer LSTM (wavefront) + mid(Tanh) + Dropout(eval) + out(Sigmoid)
# ----------------------------------------------------------------------------
def lstm_wad_kernel(x_ref, wih0_ref, bias_ref, wbig_ref, wm_ref, bm_ref,
                    wo_ref, bo_ref, o_ref, *, T, BB, H, O):
    """Everything resident in VMEM; one grid step per batch block.

    x_ref   : [T, BB, I]  time-major input, f32
    wih0_ref: [I, 8H]     bf16; cols [:4H] = layer-0 Wih (gate order i,f,o,g,
                          i/f/o cols pre-scaled by 0.5), cols [4H:] = 0
    bias_ref: [1, 8H]     f32; [:4H] = b0 (= b_ih0+b_hh0), [4H:] = b1, same
                          permutation/scaling
    wbig_ref: [2H, 8H]    bf16; rows [:H] = [Whh0 | Wih1], rows [H:] = [0 | Whh1]
    wm/bm   : [H, H] bf16 / [1, H] f32   mid_layer
    wo/bo   : [O, H] f32  / [1, O] f32   out_layer (row layout for VPU head)
    o_ref   : [BB, O]     f32
    """
    f32, bf16 = jnp.float32, jnp.bfloat16
    H4, H8 = 4 * H, 8 * H

    # ---- Hoisted loads / constants (off the serial recurrence) -------------
    wih0 = wih0_ref[...]
    wbig = wbig_ref[...]
    bias = jnp.broadcast_to(bias_ref[...], (BB, H8))          # hoist broadcast

    # sigmoid-recovery masks: i/f/o lanes -> 0.5*t + 0.5 ; g lanes -> t
    lane = jax.lax.broadcasted_iota(jnp.int32, (BB, H8), 1)
    is_g = (lane % H4) >= 3 * H
    rec_mul = jnp.where(is_g, 1.0, 0.5).astype(f32)
    rec_add = jnp.where(is_g, 0.0, 0.5).astype(f32)

    # Layer-0 input projection hoisted: addend[t][:, :4H] = x_t@Wih0 + b0,
    # addend[t][:, 4H:] = b1 (Wih0 is zero-padded on those columns).
    addend = [
        jnp.dot(x_ref[t].astype(bf16), wih0, preferred_element_type=f32) + bias
        for t in range(T)
    ]

    zeros = jnp.zeros((BB, H), f32)
    h0, c0, h1, c1 = zeros, zeros, zeros, zeros

    # ---- Wavefront recurrence: step s = layer-0 time s + layer-1 time s-1 ---
    for s in range(T + 1):                 # static -> fully unrolled for LLO
        if s == 0:
            pre = addend[0]                # h0_{-1} = h1_{-2} = 0 -> no matmul
        else:
            hcat = jnp.concatenate([h0, h1], axis=1).astype(bf16)  # [BB, 2H]
            z = jnp.dot(hcat, wbig, preferred_element_type=f32)    # one MXU push
            pre = z + (addend[s] if s < T else bias)
        act = jnp.tanh(pre) * rec_mul + rec_add   # ONE EUP pass for all gates
        if s < T:       # layer-0 LSTM cell, time step s
            a0 = act[:, :H4]
            c0 = a0[:, H:2 * H] * c0 + a0[:, :H] * a0[:, 3 * H:]
            h0 = a0[:, 2 * H:3 * H] * jnp.tanh(c0)
        if s >= 1:      # layer-1 LSTM cell, time step s-1
            a1 = act[:, H4:]
            c1 = a1[:, H:2 * H] * c1 + a1[:, :H] * a1[:, 3 * H:]
            h1 = a1[:, 2 * H:3 * H] * jnp.tanh(c1)

    # ---- Head: mid_layer(Tanh) -> Dropout(identity, eval) -> out -> Sigmoid --
    hm = jnp.tanh(jnp.dot(h1.astype(bf16), wm_ref[...],
                          preferred_element_type=f32) + bm_ref[...])
    if O == 1:
        # [H,1] projection as VPU multiply + lane reduce (skip a 1-lane MXU push).
        logit = jnp.sum(hm * wo_ref[...], axis=-1, keepdims=True) + bo_ref[...]
    else:
        logit = jax.lax.dot_general(
            hm.astype(bf16), wo_ref[...].astype(bf16),
            (((1,), (1,)), ((), ())), preferred_element_type=f32) + bo_ref[...]
    o_ref[...] = jax.nn.sigmoid(logit)


# ----------------------------------------------------------------------------
# Wrapper
# ----------------------------------------------------------------------------
@jax.jit
def lstm_wad_forward(x_bti, p):
    """x_bti: [B, T, I] batch-first input (PyTorch convention)."""
    B, T, I = x_bti.shape
    H = p["wm"].shape[0]
    O = p["bo"].shape[1]
    BB = SUBLANE
    Bp = ((B + BB - 1) // BB) * BB

    # batch-first -> time-major, pad batch to a full sublane group.
    # (Callers that can supply time-major/padded input, or tolerate the padded
    #  [Bp, O] output, can drop these tiny layout ops entirely.)
    x = jnp.transpose(x_bti.astype(jnp.float32), (1, 0, 2))   # [T, B, I]
    x = jnp.pad(x, ((0, 0), (0, Bp - B), (0, 0)))             # [T, Bp, I]

    kernel = functools.partial(lstm_wad_kernel, T=T, BB=BB, H=H, O=O)
    out = pl.pallas_call(
        kernel,
        out_shape=jax.ShapeDtypeStruct((Bp, O), jnp.float32),
        grid=(Bp // BB,),
        in_specs=[
            pl.BlockSpec((T, BB, I), lambda g: (0, g, 0)),
            pl.BlockSpec(p["wih0"].shape, lambda g: (0, 0)),
            pl.BlockSpec(p["bias"].shape, lambda g: (0, 0)),
            pl.BlockSpec(p["wbig"].shape, lambda g: (0, 0)),
            pl.BlockSpec(p["wm"].shape, lambda g: (0, 0)),
            pl.BlockSpec(p["bm"].shape, lambda g: (0, 0)),
            pl.BlockSpec(p["wo"].shape, lambda g: (0, 0)),
            pl.BlockSpec(p["bo"].shape, lambda g: (0, 0)),
        ],
        out_specs=pl.BlockSpec((BB, O), lambda g: (g, 0)),
        compiler_params=pltpu.CompilerParams(
            dimension_semantics=("parallel",)),   # v7x: 2 TCs split batch blocks
    )(x, p["wih0"], p["bias"], p["wbig"], p["wm"], p["bm"], p["wo"], p["bo"])
    return out[:B]


# ----------------------------------------------------------------------------
# Parameter construction (PyTorch-style) and packing for the kernel
# ----------------------------------------------------------------------------
def init_params(key, input_size, hidden_size, output_size, num_layers):
    """Deterministic PyTorch-style uniform(-1/sqrt(H), 1/sqrt(H)) init.

    LSTM weights stored already transposed to [in, 4H] with PyTorch gate
    order (i, f, g, o); biases kept separate (b_ih, b_hh) as in PyTorch.
    """
    bound = 1.0 / (hidden_size ** 0.5)
    params = {"lstm": []}
    for layer in range(num_layers):
        in_sz = input_size if layer == 0 else hidden_size
        key, k1, k2, k3, k4 = jax.random.split(key, 5)
        wih = jax.random.uniform(k1, (in_sz, 4 * hidden_size), jnp.float32,
                                 -bound, bound)
        whh = jax.random.uniform(k2, (hidden_size, 4 * hidden_size), jnp.float32,
                                 -bound, bound)
        b_ih = jax.random.uniform(k3, (1, 4 * hidden_size), jnp.float32,
                                  -bound, bound)
        b_hh = jax.random.uniform(k4, (1, 4 * hidden_size), jnp.float32,
                                  -bound, bound)
        params["lstm"].append((wih, whh, b_ih, b_hh))
    key, k1, k2, k3, k4 = jax.random.split(key, 5)
    params["w1"] = jax.random.uniform(k1, (hidden_size, hidden_size),
                                      jnp.float32, -bound, bound)
    params["b1"] = jax.random.uniform(k2, (1, hidden_size), jnp.float32,
                                      -bound, bound)
    params["w2"] = jax.random.uniform(k3, (hidden_size, output_size),
                                      jnp.float32, -bound, bound)
    params["b2"] = jax.random.uniform(k4, (1, output_size), jnp.float32,
                                      -bound, bound)
    return params


def _perm_scale(w):
    # PyTorch gate order (i, f, g, o) -> kernel order (i, f, o, g); pre-scale
    # the sigmoid gates (i, f, o) by 0.5 so sigmoid(x) = 0.5*tanh(0.5x)+0.5
    # becomes a single full-width tanh + FMA in the kernel.
    i, f, g, o = jnp.split(w, 4, axis=-1)
    return jnp.concatenate([0.5 * i, 0.5 * f, 0.5 * o, g], axis=-1)


def pack_params(raw):
    """Pack raw PyTorch-style params into the fused/bf16 kernel layout."""
    assert len(raw["lstm"]) == 2, "wavefront kernel is specialized for 2 LSTM layers"
    (wih0, whh0, bi0, bh0), (wih1, whh1, bi1, bh1) = raw["lstm"]
    I, H4 = wih0.shape
    H = H4 // 4
    wih0 = _perm_scale(wih0)
    whh0 = _perm_scale(whh0)
    wih1 = _perm_scale(wih1)
    whh1 = _perm_scale(whh1)
    b0 = _perm_scale(bi0 + bh0)
    b1 = _perm_scale(bi1 + bh1)

    # Layer-0 input projection, zero-padded so the same add injects b1.
    wih0p = jnp.concatenate([wih0, jnp.zeros((I, H4), jnp.float32)], axis=1)
    # Combined per-step recurrent weight: [h0|h1] @ Wbig gives layer-0 h@Whh0
    # in the first 4H columns and layer-1 (h0@Wih1 + h1@Whh1) in the last 4H.
    top = jnp.concatenate([whh0, wih1], axis=1)
    bot = jnp.concatenate([jnp.zeros((H, H4), jnp.float32), whh1], axis=1)
    wbig = jnp.concatenate([top, bot], axis=0)

    return {
        "wih0": wih0p.astype(jnp.bfloat16),                 # [I, 8H]
        "bias": jnp.concatenate([b0, b1], axis=1),          # [1, 8H] f32
        "wbig": wbig.astype(jnp.bfloat16),                   # [2H, 8H]
        "wm": raw["w1"].astype(jnp.bfloat16),                # [H, H]
        "bm": raw["b1"],                                     # [1, H] f32
        "wo": raw["w2"].T,                                   # [O, H] f32 (VPU head)
        "bo": raw["b2"],                                     # [1, O] f32
    }


# ----------------------------------------------------------------------------
# Pure-JAX reference (PyTorch semantics, original gate order, f32) for checking
# ----------------------------------------------------------------------------
def reference_forward(x_bti, raw):
    B, T, _ = x_bti.shape
    y = x_bti.astype(jnp.float32)
    for (wih, whh, b_ih, b_hh) in raw["lstm"]:
        H = whh.shape[0]
        h = jnp.zeros((B, H), jnp.float32)
        c = jnp.zeros((B, H), jnp.float32)
        outs = []
        for t in range(T):
            gates = y[:, t, :] @ wih + h @ whh + b_ih + b_hh
            i_g = jax.nn.sigmoid(gates[:, 0 * H:1 * H])
            f_g = jax.nn.sigmoid(gates[:, 1 * H:2 * H])
            g_g = jnp.tanh(gates[:, 2 * H:3 * H])
            o_g = jax.nn.sigmoid(gates[:, 3 * H:4 * H])
            c = f_g * c + i_g * g_g
            h = o_g * jnp.tanh(c)
            outs.append(h)
        y = jnp.stack(outs, axis=1)
    x_last = y[:, T - 1, :]
    hm = jnp.tanh(x_last @ raw["w1"] + raw["b1"])
    return jax.nn.sigmoid(hm @ raw["w2"] + raw["b2"])


if __name__ == "__main__":
    # Module hyper-parameters (unidirectional, look_ahead=0).
    INPUT_SIZE = 8
    HIDDEN = 32
    OUTPUT_SIZE = 1
    NUM_LAYERS = 2
    SEQ_LEN = 8
    BATCH = 2

    key = jax.random.PRNGKey(0)
    key, xk = jax.random.split(key)
    x = jax.random.normal(xk, (BATCH, SEQ_LEN, INPUT_SIZE), jnp.float32)

    raw_params = init_params(key, INPUT_SIZE, HIDDEN, OUTPUT_SIZE, NUM_LAYERS)
    params = pack_params(raw_params)

    out = jax.block_until_ready(lstm_wad_forward(x, params))
    assert out.shape == (BATCH, OUTPUT_SIZE)

    ref = jax.block_until_ready(reference_forward(x, raw_params))
    # bf16 MXU operands -> loosened tolerance (sigmoid-via-tanh is exact).
    assert jnp.allclose(out, ref, atol=2e-2, rtol=2e-2), (out, ref)
    assert bool(jnp.all((out >= 0.0) & (out <= 1.0)))
    print("KERNEL_OK")
</pallas_src>

<mosaic_0001>
module attributes {stable_mosaic.version = 11 : i64} {
  func.func @lstm_wad_kernel(%arg0: i32, %arg1: memref<8x8x8xf32, #tpu.memory_space<vmem>>, %arg2: memref<8x256xbf16, #tpu.memory_space<vmem>>, %arg3: memref<1x256xf32, #tpu.memory_space<vmem>>, %arg4: memref<64x256xbf16, #tpu.memory_space<vmem>>, %arg5: memref<32x32xbf16, #tpu.memory_space<vmem>>, %arg6: memref<1x32xf32, #tpu.memory_space<vmem>>, %arg7: memref<1x32xf32, #tpu.memory_space<vmem>>, %arg8: memref<1x1xf32, #tpu.memory_space<vmem>>, %arg9: memref<8x1xf32, #tpu.memory_space<vmem>>) attributes {dimension_semantics = [#tpu.dimension_semantics<parallel>], iteration_bounds = array<i64: 1>, scalar_prefetch = 0 : i64, scratch_operands = 0 : i64, tpu.core_type = #tpu.core_type<tc>, window_params = [{transform_indices = @transform_0, window_bounds = array<i64: 8, 8, 8>}, {pipeline_mode = #tpu.pipeline_mode<synchronous>, transform_indices = @transform_1, window_bounds = array<i64: 8, 256>}, {pipeline_mode = #tpu.pipeline_mode<synchronous>, transform_indices = @transform_2, window_bounds = array<i64: 1, 256>}, {pipeline_mode = #tpu.pipeline_mode<synchronous>, transform_indices = @transform_3, window_bounds = array<i64: 64, 256>}, {pipeline_mode = #tpu.pipeline_mode<synchronous>, transform_indices = @transform_4, window_bounds = array<i64: 32, 32>}, {pipeline_mode = #tpu.pipeline_mode<synchronous>, transform_indices = @transform_5, window_bounds = array<i64: 1, 32>}, {pipeline_mode = #tpu.pipeline_mode<synchronous>, transform_indices = @transform_6, window_bounds = array<i64: 1, 32>}, {pipeline_mode = #tpu.pipeline_mode<synchronous>, transform_indices = @transform_7, window_bounds = array<i64: 1, 1>}, {transform_indices = @transform_8, window_bounds = array<i64: 8, 1>}]} {
    %c0 = arith.constant 0 : index
    %c0_0 = arith.constant 0 : index
    %0 = vector.load %arg2[%c0, %c0_0] : memref<8x256xbf16, #tpu.memory_space<vmem>>, vector<8x256xbf16>
    %c0_1 = arith.constant 0 : index
    %c0_2 = arith.constant 0 : index
    %1 = vector.load %arg4[%c0_1, %c0_2] : memref<64x256xbf16, #tpu.memory_space<vmem>>, vector<64x256xbf16>
    %c0_3 = arith.constant 0 : index
    %c0_4 = arith.constant 0 : index
    %2 = vector.load %arg3[%c0_3, %c0_4] : memref<1x256xf32, #tpu.memory_space<vmem>>, vector<1x256xf32>
    %3 = vector.shape_cast %2 : vector<1x256xf32> to vector<1x256xf32>
    %4 = vector.broadcast %3 : vector<1x256xf32> to vector<8x256xf32>
    %5 = tpu.iota {dimensions = array<i32: 1>} : vector<8x256xi32>
    %c128_i32 = arith.constant 128 : i32
    %c0_i32 = arith.constant 0 : i32
    %6 = arith.cmpi eq, %c128_i32, %c0_i32 : i32
    %c1_i32 = arith.constant 1 : i32
    %7 = arith.select %6, %c1_i32, %c128_i32 : i32
    %8 = vector.broadcast %7 : i32 to vector<8x256xi32>
    %9 = arith.remsi %5, %8 : vector<8x256xi32>
    %c0_i32_5 = arith.constant 0 : i32
    %10 = vector.broadcast %c0_i32_5 : i32 to vector<8x256xi32>
    %11 = arith.cmpi ne, %9, %10 : vector<8x256xi32>
    %c0_i32_6 = arith.constant 0 : i32
    %12 = vector.broadcast %c0_i32_6 : i32 to vector<8x256xi32>
    %13 = arith.cmpi slt, %9, %12 : vector<8x256xi32>
    %c0_i32_7 = arith.constant 0 : i32
    %14 = arith.cmpi slt, %7, %c0_i32_7 : i32
    %15 = vector.broadcast %14 : i1 to vector<8x256xi1>
    %16 = vector.broadcast %15 : vector<8x256xi1> to vector<8x256xi1>
    %17 = arith.xori %13, %16 : vector<8x256xi1>
    %18 = arith.andi %17, %11 : vector<8x256xi1>
    %19 = vector.broadcast %7 : i32 to vector<8x256xi32>
    %20 = arith.addi %9, %19 : vector<8x256xi32>
    %21 = arith.select %18, %20, %9 : vector<8x256xi1>, vector<8x256xi32>
    %c96_i32 = arith.constant 96 : i32
    %22 = vector.broadcast %c96_i32 : i32 to vector<8x256xi32>
    %23 = arith.cmpi sge, %21, %22 : vector<8x256xi32>
    %cst = arith.constant 1.000000e+00 : f32
    %cst_8 = arith.constant 5.000000e-01 : f32
    %24 = vector.broadcast %cst : f32 to vector<8x256xf32>
    %25 = vector.broadcast %cst_8 : f32 to vector<8x256xf32>
    %26 = arith.select %23, %24, %25 : vector<8x256xi1>, vector<8x256xf32>
    %cst_9 = arith.constant 0.000000e+00 : f32
    %cst_10 = arith.constant 5.000000e-01 : f32
    %27 = vector.broadcast %cst_9 : f32 to vector<8x256xf32>
    %28 = vector.broadcast %cst_10 : f32 to vector<8x256xf32>
    %29 = arith.select %23, %27, %28 : vector<8x256xi1>, vector<8x256xf32>
    %c0_11 = arith.constant 0 : index
    %c0_12 = arith.constant 0 : index
    %c0_13 = arith.constant 0 : index
    %30 = vector.load %arg1[%c0_11, %c0_12, %c0_13] : memref<8x8x8xf32, #tpu.memory_space<vmem>>, vector<1x8x8xf32>
    %31 = vector.shape_cast %30 : vector<1x8x8xf32> to vector<8x8xf32>
    %32 = arith.truncf %31 : vector<8x8xf32> to vector<8x8xbf16>
    %cst_14 = arith.constant dense<0.000000e+00> : vector<8x256xf32>
    %33 = tpu.matmul %32, %0, %cst_14 {dimension_numbers = #tpu.dot_dimension_numbers<[1], [0], [0], [1], [0, 0, 1, 1], [], []>} : vector<8x8xbf16>, vector<8x256xbf16>, vector<8x256xf32> -> vector<8x256xf32>
    %34 = arith.addf %33, %4 : vector<8x256xf32>
    %c1 = arith.constant 1 : index
    %c0_15 = arith.constant 0 : index
    %c0_16 = arith.constant 0 : index
    %35 = vector.load %arg1[%c1, %c0_15, %c0_16] : memref<8x8x8xf32, #tpu.memory_space<vmem>>, vector<1x8x8xf32>
    %36 = vector.shape_cast %35 : vector<1x8x8xf32> to vector<8x8xf32>
    %37 = arith.truncf %36 : vector<8x8xf32> to vector<8x8xbf16>
    %cst_17 = arith.constant dense<0.000000e+00> : vector<8x256xf32>
    %38 = tpu.matmul %37, %0, %cst_17 {dimension_numbers = #tpu.dot_dimension_numbers<[1], [0], [0], [1], [0, 0, 1, 1], [], []>} : vector<8x8xbf16>, vector<8x256xbf16>, vector<8x256xf32> -> vector<8x256xf32>
    %39 = arith.addf %38, %4 : vector<8x256xf32>
    %c2 = arith.constant 2 : index
    %c0_18 = arith.constant 0 : index
    %c0_19 = arith.constant 0 : index
    %40 = vector.load %arg1[%c2, %c0_18, %c0_19] : memref<8x8x8xf32, #tpu.memory_space<vmem>>, vector<1x8x8xf32>
    %41 = vector.shape_cast %40 : vector<1x8x8xf32> to vector<8x8xf32>
    %42 = arith.truncf %41 : vector<8x8xf32> to vector<8x8xbf16>
    %cst_20 = arith.constant dense<0.000000e+00> : vector<8x256xf32>
    %43 = tpu.matmul %42, %0, %cst_20 {dimension_numbers = #tpu.dot_dimension_numbers<[1], [0], [0], [1], [0, 0, 1, 1], [], []>} : vector<8x8xbf16>, vector<8x256xbf16>, vector<8x256xf32> -> vector<8x256xf32>
    %44 = arith.addf %43, %4 : vector<8x256xf32>
    %c3 = arith.constant 3 : index
    %c0_21 = arith.constant 0 : index
    %c0_22 = arith.constant 0 : index
    %45 = vector.load %arg1[%c3, %c0_21, %c0_22] : memref<8x8x8xf32, #tpu.memory_space<vmem>>, vector<1x8x8xf32>
    %46 = vector.shape_cast %45 : vector<1x8x8xf32> to vector<8x8xf32>
    %47 = arith.truncf %46 : vector<8x8xf32> to vector<8x8xbf16>
    %cst_23 = arith.constant dense<0.000000e+00> : vector<8x256xf32>
    %48 = tpu.matmul %47, %0, %cst_23 {dimension_numbers = #tpu.dot_dimension_numbers<[1], [0], [0], [1], [0, 0, 1, 1], [], []>} : vector<8x8xbf16>, vector<8x256xbf16>, vector<8x256xf32> -> vector<8x256xf32>
    %49 = arith.addf %48, %4 : vector<8x256xf32>
    %c4 = arith.constant 4 : index
    %c0_24 = arith.constant 0 : index
    %c0_25 = arith.constant 0 : index
    %50 = vector.load %arg1[%c4, %c0_24, %c0_25] : memref<8x8x8xf32, #tpu.memory_space<vmem>>, vector<1x8x8xf32>
    %51 = vector.shape_cast %50 : vector<1x8x8xf32> to vector<8x8xf32>
    %52 = arith.truncf %51 : vector<8x8xf32> to vector<8x8xbf16>
    %cst_26 = arith.constant dense<0.000000e+00> : vector<8x256xf32>
    %53 = tpu.matmul %52, %0, %cst_26 {dimension_numbers = #tpu.dot_dimension_numbers<[1], [0], [0], [1], [0, 0, 1, 1], [], []>} : vector<8x8xbf16>, vector<8x256xbf16>, vector<8x256xf32> -> vector<8x256xf32>
    %54 = arith.addf %53, %4 : vector<8x256xf32>
    %c5 = arith.constant 5 : index
    %c0_27 = arith.constant 0 : index
    %c0_28 = arith.constant 0 : index
    %55 = vector.load %arg1[%c5, %c0_27, %c0_28] : memref<8x8x8xf32, #tpu.memory_space<vmem>>, vector<1x8x8xf32>
    %56 = vector.shape_cast %55 : vector<1x8x8xf32> to vector<8x8xf32>
    %57 = arith.truncf %56 : vector<8x8xf32> to vector<8x8xbf16>
    %cst_29 = arith.constant dense<0.000000e+00> : vector<8x256xf32>
    %58 = tpu.matmul %57, %0, %cst_29 {dimension_numbers = #tpu.dot_dimension_numbers<[1], [0], [0], [1], [0, 0, 1, 1], [], []>} : vector<8x8xbf16>, vector<8x256xbf16>, vector<8x256xf32> -> vector<8x256xf32>
    %59 = arith.addf %58, %4 : vector<8x256xf32>
    %c6 = arith.constant 6 : index
    %c0_30 = arith.constant 0 : index
    %c0_31 = arith.constant 0 : index
    %60 = vector.load %arg1[%c6, %c0_30, %c0_31] : memref<8x8x8xf32, #tpu.memory_space<vmem>>, vector<1x8x8xf32>
    %61 = vector.shape_cast %60 : vector<1x8x8xf32> to vector<8x8xf32>
    %62 = arith.truncf %61 : vector<8x8xf32> to vector<8x8xbf16>
    %cst_32 = arith.constant dense<0.000000e+00> : vector<8x256xf32>
    %63 = tpu.matmul %62, %0, %cst_32 {dimension_numbers = #tpu.dot_dimension_numbers<[1], [0], [0], [1], [0, 0, 1, 1], [], []>} : vector<8x8xbf16>, vector<8x256xbf16>, vector<8x256xf32> -> vector<8x256xf32>
    %64 = arith.addf %63, %4 : vector<8x256xf32>
    %c7 = arith.constant 7 : index
    %c0_33 = arith.constant 0 : index
    %c0_34 = arith.constant 0 : index
    %65 = vector.load %arg1[%c7, %c0_33, %c0_34] : memref<8x8x8xf32, #tpu.memory_space<vmem>>, vector<1x8x8xf32>
    %66 = vector.shape_cast %65 : vector<1x8x8xf32> to vector<8x8xf32>
    %67 = arith.truncf %66 : vector<8x8xf32> to vector<8x8xbf16>
    %cst_35 = arith.constant dense<0.000000e+00> : vector<8x256xf32>
    %68 = tpu.matmul %67, %0, %cst_35 {dimension_numbers = #tpu.dot_dimension_numbers<[1], [0], [0], [1], [0, 0, 1, 1], [], []>} : vector<8x8xbf16>, vector<8x256xbf16>, vector<8x256xf32> -> vector<8x256xf32>
    %69 = arith.addf %68, %4 : vector<8x256xf32>
    %cst_36 = arith.constant 0.000000e+00 : f32
    %70 = vector.broadcast %cst_36 : f32 to vector<8x32xf32>
    %71 = math.tanh %34 : vector<8x256xf32>
    %72 = arith.mulf %71, %26 : vector<8x256xf32>
    %73 = arith.addf %72, %29 : vector<8x256xf32>
    %74 = vector.extract_strided_slice %73 {offsets = [0, 0], sizes = [8, 128], strides = [1, 1]} : vector<8x256xf32> to vector<8x128xf32>
    %75 = vector.extract_strided_slice %74 {offsets = [0, 32], sizes = [8, 32], strides = [1, 1]} : vector<8x128xf32> to vector<8x32xf32>
    %76 = arith.mulf %75, %70 : vector<8x32xf32>
    %77 = vector.extract_strided_slice %74 {offsets = [0, 0], sizes = [8, 32], strides = [1, 1]} : vector<8x128xf32> to vector<8x32xf32>
    %78 = vector.extract_strided_slice %74 {offsets = [0, 96], sizes = [8, 32], strides = [1, 1]} : vector<8x128xf32> to vector<8x32xf32>
    %79 = arith.mulf %77, %78 : vector<8x32xf32>
    %80 = arith.addf %76, %79 : vector<8x32xf32>
    %81 = vector.extract_strided_slice %74 {offsets = [0, 64], sizes = [8, 32], strides = [1, 1]} : vector<8x128xf32> to vector<8x32xf32>
    %82 = math.tanh %80 : vector<8x32xf32>
    %83 = arith.mulf %81, %82 : vector<8x32xf32>
    %84 = tpu.concatenate %83, %70 in 1 : vector<8x32xf32>, vector<8x32xf32> -> vector<8x64xf32>
    %85 = arith.truncf %84 : vector<8x64xf32> to vector<8x64xbf16>
    %cst_37 = arith.constant dense<0.000000e+00> : vector<8x256xf32>
    %86 = tpu.matmul %85, %1, %cst_37 {dimension_numbers = #tpu.dot_dimension_numbers<[1], [0], [0], [1], [0, 0, 1, 1], [], []>} : vector<8x64xbf16>, vector<64x256xbf16>, vector<8x256xf32> -> vector<8x256xf32>
    %87 = arith.addf %86, %39 : vector<8x256xf32>
    %88 = math.tanh %87 : vector<8x256xf32>
    %89 = arith.mulf %88, %26 : vector<8x256xf32>
    %90 = arith.addf %89, %29 : vector<8x256xf32>
    %91 = vector.extract_strided_slice %90 {offsets = [0, 0], sizes = [8, 128], strides = [1, 1]} : vector<8x256xf32> to vector<8x128xf32>
    %92 = vector.extract_strided_slice %91 {offsets = [0, 32], sizes = [8, 32], strides = [1, 1]} : vector<8x128xf32> to vector<8x32xf32>
    %93 = arith.mulf %92, %80 : vector<8x32xf32>
    %94 = vector.extract_strided_slice %91 {offsets = [0, 0], sizes = [8, 32], strides = [1, 1]} : vector<8x128xf32> to vector<8x32xf32>
    %95 = vector.extract_strided_slice %91 {offsets = [0, 96], sizes = [8, 32], strides = [1, 1]} : vector<8x128xf32> to vector<8x32xf32>
    %96 = arith.mulf %94, %95 : vector<8x32xf32>
    %97 = arith.addf %93, %96 : vector<8x32xf32>
    %98 = vector.extract_strided_slice %91 {offsets = [0, 64], sizes = [8, 32], strides = [1, 1]} : vector<8x128xf32> to vector<8x32xf32>
    %99 = math.tanh %97 : vector<8x32xf32>
    %100 = arith.mulf %98, %99 : vector<8x32xf32>
    %101 = vector.extract_strided_slice %90 {offsets = [0, 128], sizes = [8, 128], strides = [1, 1]} : vector<8x256xf32> to vector<8x128xf32>
    %102 = vector.extract_strided_slice %101 {offsets = [0, 32], sizes = [8, 32], strides = [1, 1]} : vector<8x128xf32> to vector<8x32xf32>
    %103 = arith.mulf %102, %70 : vector<8x32xf32>
    %104 = vector.extract_strided_slice %101 {offsets = [0, 0], sizes = [8, 32], strides = [1, 1]} : vector<8x128xf32> to vector<8x32xf32>
    %105 = vector.extract_strided_slice %101 {offsets = [0, 96], sizes = [8, 32], strides = [1, 1]} : vector<8x128xf32> to vector<8x32xf32>
    %106 = arith.mulf %104, %105 : vector<8x32xf32>
    %107 = arith.addf %103, %106 : vector<8x32xf32>
    %108 = vector.extract_strided_slice %101 {offsets = [0, 64], sizes = [8, 32], strides = [1, 1]} : vector<8x128xf32> to vector<8x32xf32>
    %109 = math.tanh %107 : vector<8x32xf32>
    %110 = arith.mulf %108, %109 : vector<8x32xf32>
    %111 = tpu.concatenate %100, %110 in 1 : vector<8x32xf32>, vector<8x32xf32> -> vector<8x64xf32>
    %112 = arith.truncf %111 : vector<8x64xf32> to vector<8x64xbf16>
    %cst_38 = arith.constant dense<0.000000e+00> : vector<8x256xf32>
    %113 = tpu.matmul %112, %1, %cst_38 {dimension_numbers = #tpu.dot_dimension_numbers<[1], [0], [0], [1], [0, 0, 1, 1], [], []>} : vector<8x64xbf16>, vector<64x256xbf16>, vector<8x256xf32> -> vector<8x256xf32>
    %114 = arith.addf %113, %44 : vector<8x256xf32>
    %115 = math.tanh %114 : vector<8x256xf32>
    %116 = arith.mulf %115, %26 : vector<8x256xf32>
    %117 = arith.addf %116, %29 : vector<8x256xf32>
    %118 = vector.extract_strided_slice %117 {offsets = [0, 0], sizes = [8, 128], strides = [1, 1]} : vector<8x256xf32> to vector<8x128xf32>
    %119 = vector.extract_strided_slice %118 {offsets = [0, 32], sizes = [8, 32], strides = [1, 1]} : vector<8x128xf32> to vector<8x32xf32>
    %120 = arith.mulf %119, %97 : vector<8x32xf32>
    %121 = vector.extract_strided_slice %118 {offsets = [0, 0], sizes = [8, 32], strides = [1, 1]} : vector<8x128xf32> to vector<8x32xf32>
    %122 = vector.extract_strided_slice %118 {offsets = [0, 96], sizes = [8, 32], strides = [1, 1]} : vector<8x128xf32> to vector<8x32xf32>
    %123 = arith.mulf %121, %122 : vector<8x32xf32>
    %124 = arith.addf %120, %123 : vector<8x32xf32>
    %125 = vector.extract_strided_slice %118 {offsets = [0, 64], sizes = [8, 32], strides = [1, 1]} : vector<8x128xf32> to vector<8x32xf32>
    %126 = math.tanh %124 : vector<8x32xf32>
    %127 = arith.mulf %125, %126 : vector<8x32xf32>
    %128 = vector.extract_strided_slice %117 {offsets = [0, 128], sizes = [8, 128], strides = [1, 1]} : vector<8x256xf32> to vector<8x128xf32>
    %129 = vector.extract_strided_slice %128 {offsets = [0, 32], sizes = [8, 32], strides = [1, 1]} : vector<8x128xf32> to vector<8x32xf32>
    %130 = arith.mulf %129, %107 : vector<8x32xf32>
    %131 = vector.extract_strided_slice %128 {offsets = [0, 0], sizes = [8, 32], strides = [1, 1]} : vector<8x128xf32> to vector<8x32xf32>
    %132 = vector.extract_strided_slice %128 {offsets = [0, 96], sizes = [8, 32], strides = [1, 1]} : vector<8x128xf32> to vector<8x32xf32>
    %133 = arith.mulf %131, %132 : vector<8x32xf32>
    %134 = arith.addf %130, %133 : vector<8x32xf32>
    %135 = vector.extract_strided_slice %128 {offsets = [0, 64], sizes = [8, 32], strides = [1, 1]} : vector<8x128xf32> to vector<8x32xf32>
    %136 = math.tanh %134 : vector<8x32xf32>
    %137 = arith.mulf %135, %136 : vector<8x32xf32>
    %138 = tpu.concatenate %127, %137 in 1 : vector<8x32xf32>, vector<8x32xf32> -> vector<8x64xf32>
    %139 = arith.truncf %138 : vector<8x64xf32> to vector<8x64xbf16>
    %cst_39 = arith.constant dense<0.000000e+00> : vector<8x256xf32>
    %140 = tpu.matmul %139, %1, %cst_39 {dimension_numbers = #tpu.dot_dimension_numbers<[1], [0], [0], [1], [0, 0, 1, 1], [], []>} : vector<8x64xbf16>, vector<64x256xbf16>, vector<8x256xf32> -> vector<8x256xf32>
    %141 = arith.addf %140, %49 : vector<8x256xf32>
    %142 = math.tanh %141 : vector<8x256xf32>
    %143 = arith.mulf %142, %26 : vector<8x256xf32>
    %144 = arith.addf %143, %29 : vector<8x256xf32>
    %145 = vector.extract_strided_slice %144 {offsets = [0, 0], sizes = [8, 128], strides = [1, 1]} : vector<8x256xf32> to vector<8x128xf32>
    %146 = vector.extract_strided_slice %145 {offsets = [0, 32], sizes = [8, 32], strides = [1, 1]} : vector<8x128xf32> to vector<8x32xf32>
    %147 = arith.mulf %146, %124 : vector<8x32xf32>
    %148 = vector.extract_strided_slice %145 {offsets = [0, 0], sizes = [8, 32], strides = [1, 1]} : vector<8x128xf32> to vector<8x32xf32>
    %149 = vector.extract_strided_slice %145 {offsets = [0, 96], sizes = [8, 32], strides = [1, 1]} : vector<8x128xf32> to vector<8x32xf32>
    %150 = arith.mulf %148, %149 : vector<8x32xf32>
    %151 = arith.addf %147, %150 : vector<8x32xf32>
    %152 = vector.extract_strided_slice %145 {offsets = [0, 64], sizes = [8, 32], strides = [1, 1]} : vector<8x128xf32> to vector<8x32xf32>
    %153 = math.tanh %151 : vector<8x32xf32>
    %154 = arith.mulf %152, %153 : vector<8x32xf32>
    %155 = vector.extract_strided_slice %144 {offsets = [0, 128], sizes = [8, 128], strides = [1, 1]} : vector<8x256xf32> to vector<8x128xf32>
    %156 = vector.extract_strided_slice %155 {offsets = [0, 32], sizes = [8, 32], strides = [1, 1]} : vector<8x128xf32> to vector<8x32xf32>
    %157 = arith.mulf %156, %134 : vector<8x32xf32>
    %158 = vector.extract_strided_slice %155 {offsets = [0, 0], sizes = [8, 32], strides = [1, 1]} : vector<8x128xf32> to vector<8x32xf32>
    %159 = vector.extract_strided_slice %155 {offsets = [0, 96], sizes = [8, 32], strides = [1, 1]} : vector<8x128xf32> to vector<8x32xf32>
    %160 = arith.mulf %158, %159 : vector<8x32xf32>
    %161 = arith.addf %157, %160 : vector<8x32xf32>
    %162 = vector.extract_strided_slice %155 {offsets = [0, 64], sizes = [8, 32], strides = [1, 1]} : vector<8x128xf32> to vector<8x32xf32>
    %163 = math.tanh %161 : vector<8x32xf32>
    %164 = arith.mulf %162, %163 : vector<8x32xf32>
    %165 = tpu.concatenate %154, %164 in 1 : vector<8x32xf32>, vector<8x32xf32> -> vector<8x64xf32>
    %166 = arith.truncf %165 : vector<8x64xf32> to vector<8x64xbf16>
    %cst_40 = arith.constant dense<0.000000e+00> : vector<8x256xf32>
    %167 = tpu.matmul %166, %1, %cst_40 {dimension_numbers = #tpu.dot_dimension_numbers<[1], [0], [0], [1], [0, 0, 1, 1], [], []>} : vector<8x64xbf16>, vector<64x256xbf16>, vector<8x256xf32> -> vector<8x256xf32>
    %168 = arith.addf %167, %54 : vector<8x256xf32>
    %169 = math.tanh %168 : vector<8x256xf32>
    %170 = arith.mulf %169, %26 : vector<8x256xf32>
    %171 = arith.addf %170, %29 : vector<8x256xf32>
    %172 = vector.extract_strided_slice %171 {offsets = [0, 0], sizes = [8, 128], strides = [1, 1]} : vector<8x256xf32> to vector<8x128xf32>
    %173 = vector.extract_strided_slice %172 {offsets = [0, 32], sizes = [8, 32], strides = [1, 1]} : vector<8x128xf32> to vector<8x32xf32>
    %174 = arith.mulf %173, %151 : vector<8x32xf32>
    %175 = vector.extract_strided_slice %172 {offsets = [0, 0], sizes = [8, 32], strides = [1, 1]} : vector<8x128xf32> to vector<8x32xf32>
    %176 = vector.extract_strided_slice %172 {offsets = [0, 96], sizes = [8, 32], strides = [1, 1]} : vector<8x128xf32> to vector<8x32xf32>
    %177 = arith.mulf %175, %176 : vector<8x32xf32>
    %178 = arith.addf %174, %177 : vector<8x32xf32>
    %179 = vector.extract_strided_slice %172 {offsets = [0, 64], sizes = [8, 32], strides = [1, 1]} : vector<8x128xf32> to vector<8x32xf32>
    %180 = math.tanh %178 : vector<8x32xf32>
    %181 = arith.mulf %179, %180 : vector<8x32xf32>
    %182 = vector.extract_strided_slice %171 {offsets = [0, 128], sizes = [8, 128], strides = [1, 1]} : vector<8x256xf32> to vector<8x128xf32>
    %183 = vector.extract_strided_slice %182 {offsets = [0, 32], sizes = [8, 32], strides = [1, 1]} : vector<8x128xf32> to vector<8x32xf32>
    %184 = arith.mulf %183, %161 : vector<8x32xf32>
    %185 = vector.extract_strided_slice %182 {offsets = [0, 0], sizes = [8, 32], strides = [1, 1]} : vector<8x128xf32> to vector<8x32xf32>
    %186 = vector.extract_strided_slice %182 {offsets = [0, 96], sizes = [8, 32], strides = [1, 1]} : vector<8x128xf32> to vector<8x32xf32>
    %187 = arith.mulf %185, %186 : vector<8x32xf32>
    %188 = arith.addf %184, %187 : vector<8x32xf32>
    %189 = vector.extract_strided_slice %182 {offsets = [0, 64], sizes = [8, 32], strides = [1, 1]} : vector<8x128xf32> to vector<8x32xf32>
    %190 = math.tanh %188 : vector<8x32xf32>
    %191 = arith.mulf %189, %190 : vector<8x32xf32>
    %192 = tpu.concatenate %181, %191 in 1 : vector<8x32xf32>, vector<8x32xf32> -> vector<8x64xf32>
    %193 = arith.truncf %192 : vector<8x64xf32> to vector<8x64xbf16>
    %cst_41 = arith.constant dense<0.000000e+00> : vector<8x256xf32>
    %194 = tpu.matmul %193, %1, %cst_41 {dimension_numbers = #tpu.dot_dimension_numbers<[1], [0], [0], [1], [0, 0, 1, 1], [], []>} : vector<8x64xbf16>, vector<64x256xbf16>, vector<8x256xf32> -> vector<8x256xf32>
    %195 = arith.addf %194, %59 : vector<8x256xf32>
    %196 = math.tanh %195 : vector<8x256xf32>
    %197 = arith.mulf %196, %26 : vector<8x256xf32>
    %198 = arith.addf %197, %29 : vector<8x256xf32>
    %199 = vector.extract_strided_slice %198 {offsets = [0, 0], sizes = [8, 128], strides = [1, 1]} : vector<8x256xf32> to vector<8x128xf32>
    %200 = vector.extract_strided_slice %199 {offsets = [0, 32], sizes = [8, 32], strides = [1, 1]} : vector<8x128xf32> to vector<8x32xf32>
    %201 = arith.mulf %200, %178 : vector<8x32xf32>
    %202 = vector.extract_strided_slice %199 {offsets = [0, 0], sizes = [8, 32], strides = [1, 1]} : vector<8x128xf32> to vector<8x32xf32>
    %203 = vector.extract_strided_slice %199 {offsets = [0, 96], sizes = [8, 32], strides = [1, 1]} : vector<8x128xf32> to vector<8x32xf32>
    %204 = arith.mulf %202, %203 : vector<8x32xf32>
    %205 = arith.addf %201, %204 : vector<8x32xf32>
    %206 = vector.extract_strided_slice %199 {offsets = [0, 64], sizes = [8, 32], strides = [1, 1]} : vector<8x128xf32> to vector<8x32xf32>
    %207 = math.tanh %205 : vector<8x32xf32>
    %208 = arith.mulf %206, %207 : vector<8x32xf32>
    %209 = vector.extract_strided_slice %198 {offsets = [0, 128], sizes = [8, 128], strides = [1, 1]} : vector<8x256xf32> to vector<8x128xf32>
    %210 = vector.extract_strided_slice %209 {offsets = [0, 32], sizes = [8, 32], strides = [1, 1]} : vector<8x128xf32> to vector<8x32xf32>
    %211 = arith.mulf %210, %188 : vector<8x32xf32>
    %212 = vector.extract_strided_slice %209 {offsets = [0, 0], sizes = [8, 32], strides = [1, 1]} : vector<8x128xf32> to vector<8x32xf32>
    %213 = vector.extract_strided_slice %209 {offsets = [0, 96], sizes = [8, 32], strides = [1, 1]} : vector<8x128xf32> to vector<8x32xf32>
    %214 = arith.mulf %212, %213 : vector<8x32xf32>
    %215 = arith.addf %211, %214 : vector<8x32xf32>
    %216 = vector.extract_strided_slice %209 {offsets = [0, 64], sizes = [8, 32], strides = [1, 1]} : vector<8x128xf32> to vector<8x32xf32>
    %217 = math.tanh %215 : vector<8x32xf32>
    %218 = arith.mulf %216, %217 : vector<8x32xf32>
    %219 = tpu.concatenate %208, %218 in 1 : vector<8x32xf32>, vector<8x32xf32> -> vector<8x64xf32>
    %220 = arith.truncf %219 : vector<8x64xf32> to vector<8x64xbf16>
    %cst_42 = arith.constant dense<0.000000e+00> : vector<8x256xf32>
    %221 = tpu.matmul %220, %1, %cst_42 {dimension_numbers = #tpu.dot_dimension_numbers<[1], [0], [0], [1], [0, 0, 1, 1], [], []>} : vector<8x64xbf16>, vector<64x256xbf16>, vector<8x256xf32> -> vector<8x256xf32>
    %222 = arith.addf %221, %64 : vector<8x256xf32>
    %223 = math.tanh %222 : vector<8x256xf32>
    %224 = arith.mulf %223, %26 : vector<8x256xf32>
    %225 = arith.addf %224, %29 : vector<8x256xf32>
    %226 = vector.extract_strided_slice %225 {offsets = [0, 0], sizes = [8, 128], strides = [1, 1]} : vector<8x256xf32> to vector<8x128xf32>
    %227 = vector.extract_strided_slice %226 {offsets = [0, 32], sizes = [8, 32], strides = [1, 1]} : vector<8x128xf32> to vector<8x32xf32>
    %228 = arith.mulf %227, %205 : vector<8x32xf32>
    %229 = vector.extract_strided_slice %226 {offsets = [0, 0], sizes = [8, 32], strides = [1, 1]} : vector<8x128xf32> to vector<8x32xf32>
    %230 = vector.extract_strided_slice %226 {offsets = [0, 96], sizes = [8, 32], strides = [1, 1]} : vector<8x128xf32> to vector<8x32xf32>
    %231 = arith.mulf %229, %230 : vector<8x32xf32>
    %232 = arith.addf %228, %231 : vector<8x32xf32>
    %233 = vector.extract_strided_slice %226 {offsets = [0, 64], sizes = [8, 32], strides = [1, 1]} : vector<8x128xf32> to vector<8x32xf32>
    %234 = math.tanh %232 : vector<8x32xf32>
    %235 = arith.mulf %233, %234 : vector<8x32xf32>
    %236 = vector.extract_strided_slice %225 {offsets = [0, 128], sizes = [8, 128], strides = [1, 1]} : vector<8x256xf32> to vector<8x128xf32>
    %237 = vector.extract_strided_slice %236 {offsets = [0, 32], sizes = [8, 32], strides = [1, 1]} : vector<8x128xf32> to vector<8x32xf32>
    %238 = arith.mulf %237, %215 : vector<8x32xf32>
    %239 = vector.extract_strided_slice %236 {offsets = [0, 0], sizes = [8, 32], strides = [1, 1]} : vector<8x128xf32> to vector<8x32xf32>
    %240 = vector.extract_strided_slice %236 {offsets = [0, 96], sizes = [8, 32], strides = [1, 1]} : vector<8x128xf32> to vector<8x32xf32>
    %241 = arith.mulf %239, %240 : vector<8x32xf32>
    %242 = arith.addf %238, %241 : vector<8x32xf32>
    %243 = vector.extract_strided_slice %236 {offsets = [0, 64], sizes = [8, 32], strides = [1, 1]} : vector<8x128xf32> to vector<8x32xf32>
    %244 = math.tanh %242 : vector<8x32xf32>
    %245 = arith.mulf %243, %244 : vector<8x32xf32>
    %246 = tpu.concatenate %235, %245 in 1 : vector<8x32xf32>, vector<8x32xf32> -> vector<8x64xf32>
    %247 = arith.truncf %246 : vector<8x64xf32> to vector<8x64xbf16>
    %cst_43 = arith.constant dense<0.000000e+00> : vector<8x256xf32>
    %248 = tpu.matmul %247, %1, %cst_43 {dimension_numbers = #tpu.dot_dimension_numbers<[1], [0], [0], [1], [0, 0, 1, 1], [], []>} : vector<8x64xbf16>, vector<64x256xbf16>, vector<8x256xf32> -> vector<8x256xf32>
    %249 = arith.addf %248, %69 : vector<8x256xf32>
    %250 = math.tanh %249 : vector<8x256xf32>
    %251 = arith.mulf %250, %26 : vector<8x256xf32>
    %252 = arith.addf %251, %29 : vector<8x256xf32>
    %253 = vector.extract_strided_slice %252 {offsets = [0, 0], sizes = [8, 128], strides = [1, 1]} : vector<8x256xf32> to vector<8x128xf32>
    %254 = vector.extract_strided_slice %253 {offsets = [0, 32], sizes = [8, 32], strides = [1, 1]} : vector<8x128xf32> to vector<8x32xf32>
    %255 = arith.mulf %254, %232 : vector<8x32xf32>
    %256 = vector.extract_strided_slice %253 {offsets = [0, 0], sizes = [8, 32], strides = [1, 1]} : vector<8x128xf32> to vector<8x32xf32>
    %257 = vector.extract_strided_slice %253 {offsets = [0, 96], sizes = [8, 32], strides = [1, 1]} : vector<8x128xf32> to vector<8x32xf32>
    %258 = arith.mulf %256, %257 : vector<8x32xf32>
    %259 = arith.addf %255, %258 : vector<8x32xf32>
    %260 = vector.extract_strided_slice %253 {offsets = [0, 64], sizes = [8, 32], strides = [1, 1]} : vector<8x128xf32> to vector<8x32xf32>
    %261 = math.tanh %259 : vector<8x32xf32>
    %262 = arith.mulf %260, %261 : vector<8x32xf32>
    %263 = vector.extract_strided_slice %252 {offsets = [0, 128], sizes = [8, 128], strides = [1, 1]} : vector<8x256xf32> to vector<8x128xf32>
    %264 = vector.extract_strided_slice %263 {offsets = [0, 32], sizes = [8, 32], strides = [1, 1]} : vector<8x128xf32> to vector<8x32xf32>
    %265 = arith.mulf %264, %242 : vector<8x32xf32>
    %266 = vector.extract_strided_slice %263 {offsets = [0, 0], sizes = [8, 32], strides = [1, 1]} : vector<8x128xf32> to vector<8x32xf32>
    %267 = vector.extract_strided_slice %263 {offsets = [0, 96], sizes = [8, 32], strides = [1, 1]} : vector<8x128xf32> to vector<8x32xf32>
    %268 = arith.mulf %266, %267 : vector<8x32xf32>
    %269 = arith.addf %265, %268 : vector<8x32xf32>
    %270 = vector.extract_strided_slice %263 {offsets = [0, 64], sizes = [8, 32], strides = [1, 1]} : vector<8x128xf32> to vector<8x32xf32>
    %271 = math.tanh %269 : vector<8x32xf32>
    %272 = arith.mulf %270, %271 : vector<8x32xf32>
    %273 = tpu.concatenate %262, %272 in 1 : vector<8x32xf32>, vector<8x32xf32> -> vector<8x64xf32>
    %274 = arith.truncf %273 : vector<8x64xf32> to vector<8x64xbf16>
    %cst_44 = arith.constant dense<0.000000e+00> : vector<8x256xf32>
    %275 = tpu.matmul %274, %1, %cst_44 {dimension_numbers = #tpu.dot_dimension_numbers<[1], [0], [0], [1], [0, 0, 1, 1], [], []>} : vector<8x64xbf16>, vector<64x256xbf16>, vector<8x256xf32> -> vector<8x256xf32>
    %276 = arith.addf %275, %4 : vector<8x256xf32>
    %277 = math.tanh %276 : vector<8x256xf32>
    %278 = arith.mulf %277, %26 : vector<8x256xf32>
    %279 = arith.addf %278, %29 : vector<8x256xf32>
    %280 = vector.extract_strided_slice %279 {offsets = [0, 128], sizes = [8, 128], strides = [1, 1]} : vector<8x256xf32> to vector<8x128xf32>
    %281 = vector.extract_strided_slice %280 {offsets = [0, 32], sizes = [8, 32], strides = [1, 1]} : vector<8x128xf32> to vector<8x32xf32>
    %282 = arith.mulf %281, %269 : vector<8x32xf32>
    %283 = vector.extract_strided_slice %280 {offsets = [0, 0], sizes = [8, 32], strides = [1, 1]} : vector<8x128xf32> to vector<8x32xf32>
    %284 = vector.extract_strided_slice %280 {offsets = [0, 96], sizes = [8, 32], strides = [1, 1]} : vector<8x128xf32> to vector<8x32xf32>
    %285 = arith.mulf %283, %284 : vector<8x32xf32>
    %286 = arith.addf %282, %285 : vector<8x32xf32>
    %287 = vector.extract_strided_slice %280 {offsets = [0, 64], sizes = [8, 32], strides = [1, 1]} : vector<8x128xf32> to vector<8x32xf32>
    %288 = math.tanh %286 : vector<8x32xf32>
    %289 = arith.mulf %287, %288 : vector<8x32xf32>
    %290 = arith.truncf %289 : vector<8x32xf32> to vector<8x32xbf16>
    %c0_45 = arith.constant 0 : index
    %c0_46 = arith.constant 0 : index
    %291 = vector.load %arg5[%c0_45, %c0_46] : memref<32x32xbf16, #tpu.memory_space<vmem>>, vector<32x32xbf16>
    %cst_47 = arith.constant dense<0.000000e+00> : vector<8x32xf32>
    %292 = tpu.matmul %290, %291, %cst_47 {dimension_numbers = #tpu.dot_dimension_numbers<[1], [0], [0], [1], [0, 0, 1, 1], [], []>} : vector<8x32xbf16>, vector<32x32xbf16>, vector<8x32xf32> -> vector<8x32xf32>
    %c0_48 = arith.constant 0 : index
    %c0_49 = arith.constant 0 : index
    %293 = vector.load %arg6[%c0_48, %c0_49] : memref<1x32xf32, #tpu.memory_space<vmem>>, vector<1x32xf32>
    %294 = vector.broadcast %293 : vector<1x32xf32> to vector<8x32xf32>
    %295 = arith.addf %292, %294 : vector<8x32xf32>
    %296 = math.tanh %295 : vector<8x32xf32>
    %c0_50 = arith.constant 0 : index
    %c0_51 = arith.constant 0 : index
    %297 = vector.load %arg7[%c0_50, %c0_51] : memref<1x32xf32, #tpu.memory_space<vmem>>, vector<1x32xf32>
    %298 = vector.broadcast %297 : vector<1x32xf32> to vector<8x32xf32>
    %299 = arith.mulf %296, %298 : vector<8x32xf32>
    %cst_52 = arith.constant dense<0.000000e+00> : vector<8xf32>
    %300 = vector.multi_reduction <add>, %299, %cst_52 [1] : vector<8x32xf32> to vector<8xf32>
    %301 = vector.shape_cast %300 : vector<8xf32> to vector<8x1xf32>
    %c0_53 = arith.constant 0 : index
    %c0_54 = arith.constant 0 : index
    %302 = vector.load %arg8[%c0_53, %c0_54] : memref<1x1xf32, #tpu.memory_space<vmem>>, vector<1x1xf32>
    %303 = vector.broadcast %302 : vector<1x1xf32> to vector<8x1xf32>
    %304 = arith.addf %301, %303 : vector<8x1xf32>
    %305 = arith.negf %304 : vector<8x1xf32>
    %306 = math.exp %305 : vector<8x1xf32>
    %cst_55 = arith.constant 1.000000e+00 : f32
    %307 = vector.broadcast %cst_55 : f32 to vector<8x1xf32>
    %308 = arith.addf %307, %306 : vector<8x1xf32>
    %309 = arith.divf %307, %308 : vector<8x1xf32>
    %c0_56 = arith.constant 0 : index
    %c0_57 = arith.constant 0 : index
    %310 = vector.load %arg9[%c0_56, %c0_57] : memref<8x1xf32, #tpu.memory_space<vmem>>, vector<8x1xf32>
    tpu.vector_store %arg9[%c0_56, %c0_57], %309 {strides = array<i32>} : memref<8x1xf32, #tpu.memory_space<vmem>>, vector<8x1xf32>,
    return
  }
  func.func @transform_0(%arg0: i32) -> (i32, i32, i32) {
    %c0_i32 = arith.constant 0 : i32
    %c0_i32_0 = arith.constant 0 : i32
    %c0_i32_1 = arith.constant 0 : i32
    return %c0_i32, %arg0, %c0_i32_0 : i32, i32, i32
  }
  func.func @transform_1(%arg0: i32) -> (i32, i32) {
    %c0_i32 = arith.constant 0 : i32
    %c0_i32_0 = arith.constant 0 : i32
    %c0_i32_1 = arith.constant 0 : i32
    return %c0_i32, %c0_i32_0 : i32, i32
  }
  func.func @transform_2(%arg0: i32) -> (i32, i32) {
    %c0_i32 = arith.constant 0 : i32
    %c0_i32_0 = arith.constant 0 : i32
    %c0_i32_1 = arith.constant 0 : i32
    return %c0_i32, %c0_i32_0 : i32, i32
  }
  func.func @transform_3(%arg0: i32) -> (i32, i32) {
    %c0_i32 = arith.constant 0 : i32
    %c0_i32_0 = arith.constant 0 : i32
    %c0_i32_1 = arith.constant 0 : i32
    return %c0_i32, %c0_i32_0 : i32, i32
  }
  func.func @transform_4(%arg0: i32) -> (i32, i32) {
    %c0_i32 = arith.constant 0 : i32
    %c0_i32_0 = arith.constant 0 : i32
    %c0_i32_1 = arith.constant 0 : i32
    return %c0_i32, %c0_i32_0 : i32, i32
  }
  func.func @transform_5(%arg0: i32) -> (i32, i32) {
    %c0_i32 = arith.constant 0 : i32
    %c0_i32_0 = arith.constant 0 : i32
    %c0_i32_1 = arith.constant 0 : i32
    return %c0_i32, %c0_i32_0 : i32, i32
  }
  func.func @transform_6(%arg0: i32) -> (i32, i32) {
    %c0_i32 = arith.constant 0 : i32
    %c0_i32_0 = arith.constant 0 : i32
    %c0_i32_1 = arith.constant 0 : i32
    return %c0_i32, %c0_i32_0 : i32, i32
  }
  func.func @transform_7(%arg0: i32) -> (i32, i32) {
    %c0_i32 = arith.constant 0 : i32
    %c0_i32_0 = arith.constant 0 : i32
    %c0_i32_1 = arith.constant 0 : i32
    return %c0_i32, %c0_i32_0 : i32, i32
  }
  func.func @transform_8(%arg0: i32) -> (i32, i32) {
    %c0_i32 = arith.constant 0 : i32
    %c0_i32_0 = arith.constant 0 : i32
    return %arg0, %c0_i32 : i32, i32
  }
}

</mosaic_0001>

<bundles_post_ra>
// kernel: lstm_wad_forward.1
= control target key start
LH: loop header
LB: loop body
LE: loop exit
PB: predicated region body
PF: predicated region fallthrough
CT: control target
= control target key end

     0   :  { %vm89_vm0 = vcmask 1043456   ;;  %vm85_vm1 = vcmask 64512   ;;  %v47_v7 = vlaneseq  ;;  %v1237_v12 = vmov 0.5   ;;  %s1239_s23 = smov 64   ;;  %s1240_s10 = smov 96   ;;  %s1709_s1 = inlined_call_operand.vmem [shape: bf16[8,256], index: 1, kind: input, shape index: {}]   ;;  %s1710_s0 = inlined_call_operand.vmem [shape: f32[8,8,8], index: 0, kind: input, shape index: {}]   ;;  %s1711_s2 = inlined_call_operand.vmem [shape: f32[1,256], index: 2, kind: input, shape index: {}]   ;;  %s1712_s3 = inlined_call_operand.vmem [shape: bf16[64,256], index: 3, kind: input, shape index: {}]   ;;  %s1713_s4 = inlined_call_operand.vmem [shape: bf16[32,32], index: 4, kind: input, shape index: {}]   ;;  %s1714_s5 = inlined_call_operand.vmem [shape: f32[1,32], index: 5, kind: input, shape index: {}]   ;;  %s1715_s6 = inlined_call_operand.vmem [shape: f32[1,32], index: 6, kind: input, shape index: {}]   ;;  %s1716_s7 = inlined_call_operand.<no memory space> [shape: f32[1,1], index: 7, kind: input, shape index: {}]   ;;  %s1717_s8 = inlined_call_operand.vmem [shape: f32[8,1], index: 8, kind: output, shape index: {}]  }
   0x1   :  { %v32_v0 = vld [vmem:[%s1709_s1] sm:$0xff]  ;;  %v1075_v25 = vld [vmem:[%s1710_s0 + $0x10] sm:$0xff]  ;;  %v1072_v30 = vld [vmem:[%s1710_s0 + $0x8] sm:$0xff]  ;;  %vm359_vm3 = vcmask 261120   ;;  %vm402_vm4 = vcmask 523264   ;;  %vm1065_vm8 = vcmask 7168  }
   0x2   :  { %v83_v1 = vunpack.c.l.b16 %v32_v0  ;;  %v80_v2 = vld [vmem:[%s1710_s0] sm:$0xff]  ;;  %v1309_v9 = vand.u32 127, %v47_v7  ;;  %v109_v26 = vunpack.c.h.b16 %v32_v0  ;;  %v145_v27 = vpack.c.bf16 %v1075_v25, %v1075_v25  ;;  %v1119_v33 = vld [vmem:[%s1712_s3 + $0x30] sm:$0xf]  ;;  %v1157_v34 = vld [vmem:[%s1712_s3 + $0x34] sm:$0xf0] }
   0x3   :  { %v81_v5 = vpack.c.bf16 %v80_v2, %v80_v2  ;;  %v1304_v6 = vld [vmem:[%s1711_s2] sm:$0x3]  ;;  %s1238_s2 = smov 32   ;;  %v108_v31 = vpack.c.bf16 %v1072_v30, %v1072_v30  ;;  %v1362_v36 = vor.u32 %v1157_v34, %v1119_v33  ;;  %v1155_v38 = vld [vmem:[%s1712_s3 + $0x24] sm:$0xf0]  ;;  %v1087_v53 = vld [vmem:[%s1710_s0 + $0x30] sm:$0xff] }
   0x4   :  { %v84_v3 = vpack.c.b16 %v83_v1, %v83_v1  ;;  %v1307_v8 = vperm.slane %v1304_v6, 0  ;;  %vm74_vm2 = vcmp.ge.s32.totalorder %v1309_v9, 96  ;;  %v110_v28 = vpack.c.b16 %v109_v26, %v109_v26  ;;  %v1081_v32 = vld [vmem:[%s1710_s0 + $0x20] sm:$0xff]  ;;  %v1156_v39 = vld [vmem:[%s1712_s3 + $0x34] sm:$0xf] }
   0x5   :  { %v1314_v13 = vsel %vm74_vm2, 1.0, %v1237_v12  ;;  %v1317_v16 = vsel %vm74_vm2, 0.0, %v1237_v12  ;;  %v209_v35 = vpack.c.bf16 %v1081_v32, %v1081_v32  ;;  %v1111_v37 = vld [vmem:[%s1712_s3 + $0x20] sm:$0xf]  ;;  %v1121_v40 = vld [vmem:[%s1712_s3 + $0x38] sm:$0xf0]  ;;  %v273_v58 = vpack.c.bf16 %v1087_v53, %v1087_v53 }
   0x6   :  { %v1293_v4 = vsel %vm89_vm0, %v84_v3, 0  ;;  %v1337_v29 = vsel %vm89_vm0, %v110_v28, 0  ;;  %v1378_v41 = vor.u32 %v1155_v38, %v1111_v37  ;;  %v1380_v42 = vor.u32 %v1156_v39, %v1121_v40  ;;  %v1103_v43 = vld [vmem:[%s1712_s3 + $0x10] sm:$0xf]  ;;  %v1153_v44 = vld [vmem:[%s1712_s3 + $0x14] sm:$0xf0] }
   0x7   :  { %100 = vmatpush.bf16.msra.mxu0 %v1293_v4  ;;  %156 = vmatpush.bf16.msra.mxu3 %v1293_v4  ;;  %v1154_v45 = vld [vmem:[%s1712_s3 + $0x24] sm:$0xf]  ;;  %v1113_v46 = vld [vmem:[%s1712_s3 + $0x28] sm:$0xf0]  ;;  %v1396_v47 = vor.u32 %v1153_v44, %v1103_v43  ;;  %v1095_v49 = vld [vmem:[%s1712_s3] sm:$0xf] }
   0x8   :  { %124 = vmatpush.bf16.msra.mxu1 %v1293_v4  ;;  %137 = vmatpush.bf16.msra.mxu2 %v1337_v29  ;;  %v1399_v48 = vor.u32 %v1154_v45, %v1113_v46  ;;  %v1151_v50 = vld [vmem:[%s1712_s3 + $0x4] sm:$0xf0]  ;;  %v1152_v51 = vld [vmem:[%s1712_s3 + $0x14] sm:$0xf]  ;;  %v1105_v52 = vld [vmem:[%s1712_s3 + $0x18] sm:$0xf0] }
   0x9   :  { %v1417_v54 = vor.u32 %v1151_v50, %v1095_v49  ;;  %v1420_v56 = vor.u32 %v1152_v51, %v1105_v52  ;;  %v1150_v59 = vld [vmem:[%s1712_s3 + $0x4] sm:$0xf]  ;;  %v1097_v60 = vld [vmem:[%s1712_s3 + $0x8] sm:$0xf0]  ;;  %v1469_v26 = vperm.slane %v1304_v6, 1  ;;  %v49_v32 = vadd.s32 128, %v1309_v9 }
   0xa   :  { %1071 = vmatmul.msk.bf16.vlgmr.msra.gmra.mxu0 %vm85_vm1, %v81_v5  ;;  %1076 = vmatmul.msk.bf16.vlgmr.msra.gmra.mxu3 %vm85_vm1, %v145_v27  ;;  %v1438_v61 = vor.u32 %v1150_v59, %v1097_v60 }
   0xb   :  { %220 = vmatpush.bf16.msrb.mxu3 %v1293_v4  ;;  %169 = vmatpush.bf16.msrb.mxu0 %v1337_v29 }
   0xc   :  { %188 = vmatpush.bf16.msrb.mxu1 %v1293_v4  ;;  %201 = vmatpush.bf16.msrb.mxu2 %v1337_v29 }
   0xd   :  { %1074 = vmatmul.msk.bf16.vlgmr.msra.gmra.mxu2 %vm85_vm1, %v108_v31  ;;  %1073 = vmatmul.msk.bf16.vlgmr.msra.gmra.mxu1 %vm85_vm1, %v108_v31 }
   0xf   :  { %284 = vmatpush.bf16.msra.mxu3 %v1293_v4  ;;  %233 = vmatpush.bf16.msra.mxu0 %v1337_v29 }
  0x10   :  { %265 = vmatpush.bf16.msra.mxu2 %v1337_v29  ;;  %252 = vmatpush.bf16.msra.mxu1 %v1293_v4 }
  0x1a   :  { %1077 = vmatmul.msk.bf16.vlgmr.msrb.gmra.mxu0 %vm85_vm1, %v145_v27  ;;  %1082 = vmatmul.msk.bf16.vlgmr.msrb.gmra.mxu3 %vm85_vm1, %v209_v35 }
  0x1b   :  { %297 = vmatpush.bf16.msrb.mxu0 %v1337_v29  ;;  %410 = vmatpush.bf16.msrb.mxu3 %v1362_v36 }
  0x1f   :  { %411 = vmatpush.bf16.msrb.mxu3 %v1378_v41 }
  0x23   :  { %412 = vmatpush.bf16.msrb.mxu3 %v1396_v47 }
  0x27   :  { %413 = vmatpush.bf16.msrb.mxu3 %v1417_v54 }
  0x2a   :  { %1083 = vmatmul.msk.bf16.vlgmr.msra.gmra.mxu0 %vm85_vm1, %v209_v35  ;;  %1088 = vmatmul.msk.bf16.vlgmr.msra.gmra.mxu3 %vm85_vm1, %v273_v58  ;;  %v61_v35 = vand.u32 127, %v49_v32 }
  0x2b   :  { %423 = vmatpush.bf16.msra.mxu0 %v1380_v42  ;;  %568 = vmatpush.bf16.msra.mxu3 %v1362_v36 }
  0x2c   :  { %vm75_vm5 = vcmp.ge.s32.totalorder %v61_v35, 96 }
  0x2d   :  { %v1477_v43 = vsel %vm75_vm5, 1.0, %v1237_v12  ;;  %v1482_v44 = vsel %vm75_vm5, 0.0, %v1237_v12 }
  0x2f   :  { %424 = vmatpush.bf16.msra.mxu0 %v1399_v48  ;;  %569 = vmatpush.bf16.msra.mxu3 %v1378_v41 }
  0x33   :  { %425 = vmatpush.bf16.msra.mxu0 %v1420_v56  ;;  %570 = vmatpush.bf16.msra.mxu3 %v1396_v47 }
  0x37   :  { %571 = vmatpush.bf16.msra.mxu3 %v1417_v54  ;;  %426 = vmatpush.bf16.msra.mxu0 %v1438_v61 }
  0x3a   :  { %1089 = vmatmul.msk.bf16.vlgmr.msrb.gmra.mxu0 %vm85_vm1, %v273_v58 }
  0x3b   :  { %581 = vmatpush.bf16.msrb.mxu0 %v1380_v42 }
  0x3f   :  { %582 = vmatpush.bf16.msrb.mxu0 %v1399_v48 }
  0x43   :  { %583 = vmatpush.bf16.msrb.mxu0 %v1420_v56 }
  0x47   :  { %584 = vmatpush.bf16.msrb.mxu0 %v1438_v61 }
  0x87   :  { %v102_v10 = vpop.f32.mrf.mxu0 }
  0x88   :  { %v103_v11 = vadd.f32 %v102_v10, %v1307_v8 }
  0x8a   :  { %1167 = vtanh.f32 %v103_v11  ;;  %v126_v2 = vpop.f32.mrf.mxu1 }
  0x8b   :  { %v127_v27 = vadd.f32 %v126_v2, %v1307_v8 }
  0x8d   :  { %v1447_v63 = vpop.f32.mrf.mxu3 }
  0x8f   :  { %v104_v14 = vpop.f32.mrf.mxu0 }
  0x90   :  { %v1168_v15 = vpop.eup %1167  ;;  %v139_v3 = vpop.f32.mrf.mxu2 }
  0x91   :  { %v336_v17 = vmul.f32 %v1168_v15, %v1314_v13  ;;  %v140_v28 = vadd.f32 %v139_v3, %v1469_v26  ;;  %v1084_v3 = vld [vmem:[%s1710_s0 + $0x28] sm:$0xff] }
  0x92   :  { %v128_v15 = vpop.f32.mrf.mxu1 }
  0x93   :  { %v1321_v18 = vadd.f32 %v336_v17, %v1317_v16 }
  0x95   :  { %340 = vrot.lane.b32.xlu0 %v1321_v18, %s1238_s2  ;;  %v338_v21 = vmul.f32 0.0, %v1321_v18  ;;  %v160_v1 = vpop.f32.mrf.mxu3 }
  0x97   :  { %v1445_v62 = vpop.f32.mrf.mxu0 }
  0x98   :  { %v141_v17 = vpop.f32.mrf.mxu2 }
  0x9d   :  { %v1454_v14 = vpop.f32.mrf.mxu3 }
  0x9f   :  { %v173_v0 = vpop.f32.mrf.mxu0 }
  0xa7   :  { %v1450_v11 = vpop.f32.mrf.mxu0 }
 0x107   :  { %v341_v19 = vpop.permute.xlu0 %340 }
 0x108   :  { %v343_v20 = vmul.f32 %v341_v19, %v1321_v18  ;;  %v224_v19 = vpop.f32.mrf.mxu3 }
 0x10a   :  { %345 = vrot.lane.b32.xlu0 %v343_v20, %s1238_s2 }
 0x17c   :  { %v346_v22 = vpop.permute.xlu0 %345 }
 0x17d   :  { %v1328_v23 = vadd.f32 %v346_v22, %v338_v21  ;;  %v1466_v21 = vpop.f32.mrf.mxu3 }
 0x17f   :  { %1169 = vtanh.f32 %v1328_v23 }
 0x185   :  { %v1170_v24 = vpop.eup %1169 }
 0x186   :  { %351 = vrot.lane.b32.xlu1 %v1170_v24, %s1238_s2  ;;  %v288_v24 = vpop.f32.mrf.mxu3 }
 0x1f8   :  { %v352_v55 = vpop.permute.xlu1 %351 }
 0x1f9   :  { %v354_v57 = vmul.f32 %v352_v55, %v1321_v18  ;;  %v237_v18 = vpop.f32.mrf.mxu0 }
 0x1fb   :  { %356 = vrot.lane.b32.xlu1 %v354_v57, %s1239_s23 }
 0x201   :  { %v1464_v20 = vpop.f32.mrf.mxu0 }
 0x209   :  { %v301_v22 = vpop.f32.mrf.mxu0 }
 0x26d   :  { %v357_v5 = vpop.permute.xlu1 %356 }
 0x26e   :  { %v360_v7 = vsel %vm359_vm3, %v357_v5, 0.0  ;;  %v241_v5 = vpack.c.bf16 %v1084_v3, %v1084_v3 }
 0x26f   :  { %v361_v10 = vpack.c.bf16 %v360_v7, %v360_v7 }
 0x271   :  { %1125 = vmatmul.msk.bf16.vlgmr.msrb.gmra.mxu3 %vm402_vm4, %v361_v10  ;;  %1126 = vmatmul.msk.bf16.vlgmr.msra.gmra.mxu0 %vm402_vm4, %v361_v10 }
 0x272   :  { %726 = vmatpush.bf16.msrb.mxu3 %v1362_v36  ;;  %739 = vmatpush.bf16.msra.mxu0 %v1380_v42 }
 0x276   :  { %727 = vmatpush.bf16.msrb.mxu3 %v1378_v41  ;;  %740 = vmatpush.bf16.msra.mxu0 %v1399_v48 }
 0x27a   :  { %728 = vmatpush.bf16.msrb.mxu3 %v1396_v47  ;;  %741 = vmatpush.bf16.msra.mxu0 %v1420_v56 }
 0x27e   :  { %729 = vmatpush.bf16.msrb.mxu3 %v1417_v54  ;;  %742 = vmatpush.bf16.msra.mxu0 %v1438_v61 }
 0x2ee   :  { %v428_v25 = vpop.f32.mrf.mxu0 }
 0x2ef   :  { %v429_v34 = vadd.f32 %v428_v25, %v140_v28 }
 0x2f4   :  { %v415_v30 = vpop.f32.mrf.mxu3 }
 0x2f5   :  { %v416_v31 = vadd.f32 %v415_v30, %v127_v27 }
 0x2f6   :  { %v430_v33 = vpop.f32.mrf.mxu0 }
 0x2f7   :  { %1171 = vtanh.f32 %v416_v31 }
 0x2f8   :  { %1173 = vtanh.f32 %v429_v34 }
 0x2fc   :  { %v417_v37 = vpop.f32.mrf.mxu3 }
 0x2fd   :  { %v1172_v38 = vpop.eup %1171 }
 0x2fe   :  { %v434_v39 = vmul.f32 %v1172_v38, %v1314_v13  ;;  %v1174_v40 = vpop.eup %1173  ;;  %v159_v38 = vadd.f32 %v1447_v63, %v1307_v8 }
 0x2ff   :  { %v435_v9 = vmul.f32 %v1174_v40, %v1477_v43  ;;  %v172_v40 = vadd.f32 %v1445_v62, %v1469_v26 }
 0x300   :  { %v436_v6 = vadd.f32 %v434_v39, %v1317_v16 }
 0x301   :  { %v437_v45 = vadd.f32 %v435_v9, %v1482_v44 }
 0x302   :  { %440 = vrot.lane.b32.xlu2 %v436_v6, %s1238_s2  ;;  %v438_v52 = vmul.f32 %v436_v6, %v1328_v23  ;;  %v1078_v23 = vld [vmem:[%s1710_s0 + $0x18] sm:$0xff] }
 0x303   :  { %v455_v12 = vmul.f32 0.0, %v437_v45  ;;  %v177_v2 = vpack.c.bf16 %v1078_v23, %v1078_v23 }
 0x305   :  { %1080 = vmatmul.msk.bf16.vlgmr.msrb.gmra.mxu2 %vm85_vm1, %v177_v2  ;;  %1079 = vmatmul.msk.bf16.vlgmr.msrb.gmra.mxu1 %vm85_vm1, %v177_v2 }
 0x306   :  { %329 = vmatpush.bf16.msrb.mxu2 %v1337_v29  ;;  %316 = vmatpush.bf16.msrb.mxu1 %v1293_v4  ;;  %v1090_v4 = vld [vmem:[%s1710_s0 + $0x38] sm:$0xff] }
 0x307   :  { %v305_v10 = vpack.c.bf16 %v1090_v4, %v1090_v4 }
 0x30a   :  { %457 = vrot.lane.b32.xlu2 %v437_v45, %s1238_s2 }
 0x315   :  { %1086 = vmatmul.msk.bf16.vlgmr.msra.gmra.mxu2 %vm85_vm1, %v241_v5  ;;  %1085 = vmatmul.msk.bf16.vlgmr.msra.gmra.mxu1 %vm85_vm1, %v241_v5 }
 0x316   :  { %502 = vmatpush.bf16.msra.mxu2 %v1380_v42  ;;  %489 = vmatpush.bf16.msra.mxu1 %v1362_v36 }
 0x31a   :  { %503 = vmatpush.bf16.msra.mxu2 %v1399_v48  ;;  %490 = vmatpush.bf16.msra.mxu1 %v1378_v41 }
 0x31e   :  { %504 = vmatpush.bf16.msra.mxu2 %v1420_v56  ;;  %491 = vmatpush.bf16.msra.mxu1 %v1396_v47 }
 0x322   :  { %505 = vmatpush.bf16.msra.mxu2 %v1438_v61  ;;  %492 = vmatpush.bf16.msra.mxu1 %v1417_v54 }
 0x325   :  { %1092 = vmatmul.msk.bf16.vlgmr.msrb.gmra.mxu2 %vm85_vm1, %v305_v10  ;;  %1091 = vmatmul.msk.bf16.vlgmr.msrb.gmra.mxu1 %vm85_vm1, %v305_v10 }
 0x326   :  { %647 = vmatpush.bf16.msrb.mxu1 %v1362_v36  ;;  %660 = vmatpush.bf16.msrb.mxu2 %v1380_v42 }
 0x32a   :  { %648 = vmatpush.bf16.msrb.mxu1 %v1378_v41  ;;  %661 = vmatpush.bf16.msrb.mxu2 %v1399_v48 }
 0x32e   :  { %649 = vmatpush.bf16.msrb.mxu1 %v1396_v47  ;;  %662 = vmatpush.bf16.msrb.mxu2 %v1420_v56 }
 0x332   :  { %650 = vmatpush.bf16.msrb.mxu1 %v1417_v54  ;;  %663 = vmatpush.bf16.msrb.mxu2 %v1438_v61 }
 0x35c   :  { %v441_v46 = vpop.permute.xlu2 %440 }
 0x35d   :  { %v443_v49 = vmul.f32 %v441_v46, %v436_v6 }
 0x35f   :  { %445 = vrot.lane.b32.xlu0 %v443_v49, %s1238_s2 }
 0x364   :  { %v458_v50 = vpop.permute.xlu2 %457 }
 0x365   :  { %v460_v51 = vmul.f32 %v458_v50, %v437_v45 }
 0x367   :  { %462 = vrot.lane.b32.xlu1 %v460_v51, %s1238_s2 }
 0x382   :  { %v1537_v22 = vpop.f32.mrf.mxu1 }
 0x388   :  { %v1541_v24 = vpop.f32.mrf.mxu2 }
 0x38a   :  { %v192_v25 = vpop.f32.mrf.mxu1 }
 0x390   :  { %v205_v27 = vpop.f32.mrf.mxu2 }
 0x392   :  { %v1547_v28 = vpop.f32.mrf.mxu1 }
 0x398   :  { %v1549_v30 = vpop.f32.mrf.mxu2 }
 0x39a   :  { %v256_v31 = vpop.f32.mrf.mxu1 }
 0x3a0   :  { %v269_v32 = vpop.f32.mrf.mxu2 }
 0x3a2   :  { %v1551_v33 = vpop.f32.mrf.mxu1 }
 0x3a8   :  { %v1553_v34 = vpop.f32.mrf.mxu2 }
 0x3aa   :  { %v320_v35 = vpop.f32.mrf.mxu1 }
 0x3b0   :  { %v333_v37 = vpop.f32.mrf.mxu2 }
 0x3d1   :  { %v446_v53 = vpop.permute.xlu0 %445 }
 0x3d2   :  { %v1489_v55 = vadd.f32 %v446_v53, %v438_v52 }
 0x3d4   :  { %1175 = vtanh.f32 %v1489_v55 }
 0x3d9   :  { %v463_v57 = vpop.permute.xlu1 %462 }
 0x3da   :  { %v1176_v58 = vpop.eup %1175  ;;  %v1492_v59 = vadd.f32 %v463_v57, %v455_v12 }
 0x3db   :  { %451 = vrot.lane.b32.xlu2 %v1176_v58, %s1238_s2 }
 0x3dc   :  { %1177 = vtanh.f32 %v1492_v59 }
 0x3e2   :  { %v1178_v60 = vpop.eup %1177 }
 0x3e3   :  { %468 = vrot.lane.b32.xlu0 %v1178_v60, %s1238_s2 }
 0x435   :  { %v452_v0 = vpop.permute.xlu2 %451 }
 0x436   :  { %v454_v1 = vmul.f32 %v452_v0, %v436_v6 }
 0x438   :  { %473 = vrot.lane.b32.xlu1 %v454_v1, %s1239_s23 }
 0x455   :  { %v469_v29 = vpop.permute.xlu0 %468 }
 0x456   :  { %v471_v7 = vmul.f32 %v469_v29, %v437_v45 }
 0x458   :  { %477 = vrot.lane.b32.xlu2 %v471_v7, %s1240_s10 }
 0x4aa   :  { %v474_v15 = vpop.permute.xlu1 %473 }
 0x4b2   :  { %v478_v17 = vpop.permute.xlu2 %477 }
 0x4b3   :  { %v480_v18 = vsel %vm359_vm3, %v474_v15, %v478_v17 }
 0x4b4   :  { %v481_v19 = vpack.c.bf16 %v480_v18, %v480_v18 }
 0x4b6   :  { %1127 = vmatmul.msk.bf16.vlgmr.msra.gmra.mxu1 %vm402_vm4, %v481_v19  ;;  %1128 = vmatmul.msk.bf16.vlgmr.msra.gmra.mxu2 %vm402_vm4, %v481_v19 }
 0x4b7   :  { %818 = vmatpush.bf16.msra.mxu2 %v1380_v42  ;;  %805 = vmatpush.bf16.msra.mxu1 %v1362_v36 }
 0x4bb   :  { %819 = vmatpush.bf16.msra.mxu2 %v1399_v48  ;;  %806 = vmatpush.bf16.msra.mxu1 %v1378_v41 }
 0x4bf   :  { %820 = vmatpush.bf16.msra.mxu2 %v1420_v56  ;;  %807 = vmatpush.bf16.msra.mxu1 %v1396_v47 }
 0x4c3   :  { %821 = vmatpush.bf16.msra.mxu2 %v1438_v61  ;;  %808 = vmatpush.bf16.msra.mxu1 %v1417_v54 }
 0x533   :  { %v494_v39 = vpop.f32.mrf.mxu1 }
 0x534   :  { %v495_v6 = vadd.f32 %v494_v39, %v159_v38 }
 0x536   :  { %1179 = vtanh.f32 %v495_v6 }
 0x539   :  { %v507_v9 = vpop.f32.mrf.mxu2 }
 0x53a   :  { %v508_v45 = vadd.f32 %v507_v9, %v172_v40 }
 0x53b   :  { %v496_v46 = vpop.f32.mrf.mxu1 }
 0x53c   :  { %v1180_v49 = vpop.eup %1179  ;;  %1181 = vtanh.f32 %v508_v45 }
 0x53d   :  { %v513_v50 = vmul.f32 %v1180_v49, %v1314_v13 }
 0x53f   :  { %v515_v51 = vadd.f32 %v513_v50, %v1317_v16 }
 0x541   :  { %v509_v52 = vpop.f32.mrf.mxu2  ;;  %519 = vrot.lane.b32.xlu0 %v515_v51, %s1238_s2  ;;  %v517_v0 = vmul.f32 %v515_v51, %v1489_v55 }
 0x542   :  { %v1182_v53 = vpop.eup %1181 }
 0x543   :  { %v514_v63 = vmul.f32 %v1182_v53, %v1477_v43 }
 0x545   :  { %v516_v12 = vadd.f32 %v514_v63, %v1482_v44 }
 0x547   :  { %536 = vrot.lane.b32.xlu1 %v516_v12, %s1238_s2  ;;  %v534_v3 = vmul.f32 %v516_v12, %v1492_v59  ;;  %v204_v59 = vadd.f32 %v1541_v24, %v1469_v26 }
 0x5b3   :  { %v520_v62 = vpop.permute.xlu0 %519 }
 0x5b4   :  { %v522_v57 = vmul.f32 %v520_v62, %v515_v51 }
 0x5b6   :  { %524 = vrot.lane.b32.xlu2 %v522_v57, %s1238_s2 }
 0x5b9   :  { %v537_v58 = vpop.permute.xlu1 %536 }
 0x5ba   :  { %v539_v60 = vmul.f32 %v537_v58, %v516_v12 }
 0x5bc   :  { %541 = vrot.lane.b32.xlu0 %v539_v60, %s1238_s2 }
 0x610   :  { %v525_v1 = vpop.permute.xlu2 %524 }
 0x611   :  { %v527_v23 = vadd.f32 %v525_v1, %v517_v0 }
 0x613   :  { %1183 = vtanh.f32 %v527_v23 }
 0x619   :  { %v1184_v2 = vpop.eup %1183 }
 0x61a   :  { %530 = vrot.lane.b32.xlu1 %v1184_v2, %s1238_s2 }
 0x62e   :  { %v542_v5 = vpop.permute.xlu0 %541 }
 0x62f   :  { %v544_v4 = vadd.f32 %v542_v5, %v534_v3  ;;  %v223_v3 = vadd.f32 %v1454_v14, %v1307_v8 }
 0x631   :  { %1185 = vtanh.f32 %v544_v4 }
 0x637   :  { %v1186_v29 = vpop.eup %1185 }
 0x638   :  { %547 = vrot.lane.b32.xlu2 %v1186_v29, %s1238_s2  ;;  %v236_v29 = vadd.f32 %v1450_v11, %v1469_v26 }
 0x68c   :  { %v531_v7 = vpop.permute.xlu1 %530 }
 0x68d   :  { %v533_v10 = vmul.f32 %v531_v7, %v515_v51 }
 0x68f   :  { %552 = vrot.lane.b32.xlu0 %v533_v10, %s1239_s23 }
 0x692   :  { %v548_v15 = vpop.permute.xlu2 %547 }
 0x693   :  { %v550_v55 = vmul.f32 %v548_v15, %v516_v12 }
 0x695   :  { %556 = vrot.lane.b32.xlu1 %v550_v55, %s1240_s10 }
 0x701   :  { %v553_v17 = vpop.permute.xlu0 %552 }
 0x707   :  { %v557_v18 = vpop.permute.xlu1 %556 }
 0x708   :  { %v559_v19 = vsel %vm359_vm3, %v553_v17, %v557_v18 }
 0x709   :  { %v560_v25 = vpack.c.bf16 %v559_v19, %v559_v19 }
 0x70b   :  { %1129 = vmatmul.msk.bf16.vlgmr.msra.gmra.mxu3 %vm402_vm4, %v560_v25  ;;  %1130 = vmatmul.msk.bf16.vlgmr.msrb.gmra.mxu0 %vm402_vm4, %v560_v25 }
 0x70c   :  { %884 = vmatpush.bf16.msra.mxu3 %v1362_v36  ;;  %897 = vmatpush.bf16.msrb.mxu0 %v1380_v42  ;;  %v191_v36 = vadd.f32 %v1537_v22, %v1307_v8 }
 0x710   :  { %885 = vmatpush.bf16.msra.mxu3 %v1378_v41  ;;  %898 = vmatpush.bf16.msrb.mxu0 %v1399_v48 }
 0x714   :  { %886 = vmatpush.bf16.msra.mxu3 %v1396_v47  ;;  %899 = vmatpush.bf16.msrb.mxu0 %v1420_v56 }
 0x718   :  { %887 = vmatpush.bf16.msra.mxu3 %v1417_v54  ;;  %900 = vmatpush.bf16.msrb.mxu0 %v1438_v61 }
 0x788   :  { %v586_v27 = vpop.f32.mrf.mxu0 }
 0x789   :  { %v587_v31 = vadd.f32 %v586_v27, %v204_v59 }
 0x78b   :  { %1187 = vtanh.f32 %v587_v31 }
 0x78e   :  { %v573_v41 = vpop.f32.mrf.mxu3 }
 0x78f   :  { %v574_v32 = vadd.f32 %v573_v41, %v191_v36 }
 0x790   :  { %v588_v35 = vpop.f32.mrf.mxu0 }
 0x791   :  { %v1188_v37 = vpop.eup %1187  ;;  %1189 = vtanh.f32 %v574_v32 }
 0x792   :  { %v593_v47 = vmul.f32 %v1188_v37, %v1477_v43 }
 0x794   :  { %v595_v54 = vadd.f32 %v593_v47, %v1482_v44 }
 0x796   :  { %615 = vrot.lane.b32.xlu0 %v595_v54, %s1238_s2  ;;  %v575_v38 = vpop.f32.mrf.mxu3  ;;  %v613_v46 = vmul.f32 %v595_v54, %v544_v4 }
 0x797   :  { %v1190_v39 = vpop.eup %1189 }
 0x798   :  { %v592_v24 = vmul.f32 %v1190_v39, %v1314_v13 }
 0x79a   :  { %v594_v6 = vadd.f32 %v592_v24, %v1317_v16 }
 0x79c   :  { %598 = vrot.lane.b32.xlu2 %v594_v6, %s1238_s2  ;;  %v596_v51 = vmul.f32 %v594_v6, %v527_v23 }
 0x7f6   :  { %v599_v22 = vpop.permute.xlu2 %598 }
 0x7f7   :  { %v601_v40 = vmul.f32 %v599_v22, %v594_v6 }
 0x7f9   :  { %603 = vrot.lane.b32.xlu1 %v601_v40, %s1238_s2 }
 0x808   :  { %v616_v9 = vpop.permute.xlu0 %615 }
 0x809   :  { %v618_v45 = vmul.f32 %v616_v9, %v595_v54  ;;  %v268_v9 = vadd.f32 %v1549_v30, %v1469_v26 }
 0x80b   :  { %620 = vrot.lane.b32.xlu2 %v618_v45, %s1238_s2 }
 0x865   :  { %v621_v49 = vpop.permute.xlu2 %620 }
 0x866   :  { %v623_v50 = vadd.f32 %v621_v49, %v613_v46  ;;  %v255_v49 = vadd.f32 %v1547_v28, %v1307_v8 }
 0x868   :  { %1191 = vtanh.f32 %v623_v50 }
 0x86b   :  { %v604_v52 = vpop.permute.xlu1 %603 }
 0x86c   :  { %v606_v53 = vadd.f32 %v604_v52, %v596_v51 }
 0x86e   :  { %v1192_v63 = vpop.eup %1191  ;;  %1193 = vtanh.f32 %v606_v53 }
 0x86f   :  { %626 = vrot.lane.b32.xlu1 %v1192_v63, %s1238_s2 }
 0x874   :  { %v1194_v12 = vpop.eup %1193 }
 0x875   :  { %609 = vrot.lane.b32.xlu0 %v1194_v12, %s1238_s2 }
 0x8e1   :  { %v627_v62 = vpop.permute.xlu1 %626 }
 0x8e2   :  { %v629_v57 = vmul.f32 %v627_v62, %v595_v54 }
 0x8e4   :  { %635 = vrot.lane.b32.xlu0 %v629_v57, %s1240_s10 }
 0x8e7   :  { %v610_v58 = vpop.permute.xlu0 %609 }
 0x8e8   :  { %v612_v60 = vmul.f32 %v610_v58, %v594_v6 }
 0x8ea   :  { %631 = vrot.lane.b32.xlu2 %v612_v60, %s1239_s23 }
 0x944   :  { %v632_v0 = vpop.permute.xlu2 %631 }
 0x956   :  { %v636_v1 = vpop.permute.xlu0 %635 }
 0x957   :  { %v638_v23 = vsel %vm359_vm3, %v632_v0, %v636_v1 }
 0x958   :  { %v639_v2 = vpack.c.bf16 %v638_v23, %v638_v23 }
 0x95a   :  { %1131 = vmatmul.msk.bf16.vlgmr.msrb.gmra.mxu1 %vm402_vm4, %v639_v2  ;;  %1132 = vmatmul.msk.bf16.vlgmr.msrb.gmra.mxu2 %vm402_vm4, %v639_v2 }
 0x95b   :  { %963 = vmatpush.bf16.msrb.mxu1 %v1380_v42 }
 0x95f   :  { %964 = vmatpush.bf16.msrb.mxu1 %v1399_v48 }
 0x963   :  { %965 = vmatpush.bf16.msrb.mxu1 %v1420_v56 }
 0x967   :  { %966 = vmatpush.bf16.msrb.mxu1 %v1438_v61 }
 0x9d7   :  { %v652_v5 = vpop.f32.mrf.mxu1 }
 0x9d8   :  { %v653_v4 = vadd.f32 %v652_v5, %v223_v3 }
 0x9da   :  { %1195 = vtanh.f32 %v653_v4 }
 0x9dd   :  { %v665_v7 = vpop.f32.mrf.mxu2 }
 0x9de   :  { %v666_v10 = vadd.f32 %v665_v7, %v236_v29 }
 0x9df   :  { %v654_v15 = vpop.f32.mrf.mxu1 }
 0x9e0   :  { %v1196_v55 = vpop.eup %1195  ;;  %1197 = vtanh.f32 %v666_v10 }
 0x9e1   :  { %v671_v42 = vmul.f32 %v1196_v55, %v1314_v13 }
 0x9e3   :  { %v673_v48 = vadd.f32 %v671_v42, %v1317_v16 }
 0x9e5   :  { %v667_v56 = vpop.f32.mrf.mxu2  ;;  %677 = vrot.lane.b32.xlu1 %v673_v48, %s1238_s2  ;;  %v675_v41 = vmul.f32 %v673_v48, %v606_v53 }
 0x9e6   :  { %v1198_v61 = vpop.eup %1197 }
 0x9e7   :  { %v672_v14 = vmul.f32 %v1198_v61, %v1477_v43 }
 0x9e9   :  { %v674_v17 = vadd.f32 %v672_v14, %v1482_v44 }
 0x9eb   :  { %694 = vrot.lane.b32.xlu2 %v674_v17, %s1238_s2  ;;  %v692_v59 = vmul.f32 %v674_v17, %v623_v50 }
 0xa45   :  { %v695_v11 = vpop.permute.xlu2 %694 }
 0xa46   :  { %v697_v18 = vmul.f32 %v695_v11, %v674_v17  ;;  %v287_v11 = vadd.f32 %v1466_v21, %v1307_v8 }
 0xa48   :  { %699 = vrot.lane.b32.xlu1 %v697_v18, %s1238_s2 }
 0xa57   :  { %v678_v19 = vpop.permute.xlu1 %677 }
 0xa58   :  { %v680_v25 = vmul.f32 %v678_v19, %v673_v48 }
 0xa5a   :  { %682 = vrot.lane.b32.xlu0 %v680_v25, %s1238_s2  ;;  %v300_v25 = vadd.f32 %v1464_v20, %v1469_v26 }
 0xaba   :  { %v700_v27 = vpop.permute.xlu1 %699 }
 0xabb   :  { %v702_v31 = vadd.f32 %v700_v27, %v692_v59 }
 0xabd   :  { %1199 = vtanh.f32 %v702_v31 }
 0xac3   :  { %v1200_v36 = vpop.eup %1199 }
 0xac4   :  { %705 = vrot.lane.b32.xlu0 %v1200_v36, %s1238_s2 }
 0xacc   :  { %v683_v32 = vpop.permute.xlu0 %682 }
 0xacd   :  { %v685_v35 = vadd.f32 %v683_v32, %v675_v41 }
 0xacf   :  { %1201 = vtanh.f32 %v685_v35 }
 0xad5   :  { %v1202_v37 = vpop.eup %1201 }
 0xad6   :  { %688 = vrot.lane.b32.xlu2 %v1202_v37, %s1238_s2 }
 0xb30   :  { %v689_v47 = vpop.permute.xlu2 %688 }
 0xb31   :  { %v691_v54 = vmul.f32 %v689_v47, %v673_v48 }
 0xb33   :  { %710 = vrot.lane.b32.xlu1 %v691_v54, %s1239_s23 }
 0xb36   :  { %v706_v38 = vpop.permute.xlu0 %705 }
 0xb37   :  { %v708_v39 = vmul.f32 %v706_v38, %v674_v17 }
 0xb39   :  { %714 = vrot.lane.b32.xlu2 %v708_v39, %s1240_s10 }
 0xb93   :  { %v715_v24 = vpop.permute.xlu2 %714 }
 0xba5   :  { %v711_v6 = vpop.permute.xlu1 %710 }
 0xba6   :  { %v717_v22 = vsel %vm359_vm3, %v711_v6, %v715_v24 }
 0xba7   :  { %v718_v40 = vpack.c.bf16 %v717_v22, %v717_v22 }
 0xba9   :  { %1133 = vmatmul.msk.bf16.vlgmr.msrb.gmra.mxu3 %vm402_vm4, %v718_v40  ;;  %1134 = vmatmul.msk.bf16.vlgmr.msra.gmra.mxu0 %vm402_vm4, %v718_v40 }
 0xc26   :  { %v744_v45 = vpop.f32.mrf.mxu0 }
 0xc27   :  { %v745_v46 = vadd.f32 %v744_v45, %v268_v9 }
 0xc29   :  { %1203 = vtanh.f32 %v745_v46 }
 0xc2c   :  { %v731_v50 = vpop.f32.mrf.mxu3 }
 0xc2d   :  { %v732_v51 = vadd.f32 %v731_v50, %v255_v49 }
 0xc2e   :  { %v746_v52 = vpop.f32.mrf.mxu0 }
 0xc2f   :  { %v1204_v53 = vpop.eup %1203  ;;  %1205 = vtanh.f32 %v732_v51 }
 0xc30   :  { %v751_v63 = vmul.f32 %v1204_v53, %v1477_v43 }
 0xc32   :  { %v753_v12 = vadd.f32 %v751_v63, %v1482_v44 }
 0xc34   :  { %773 = vrot.lane.b32.xlu1 %v753_v12, %s1238_s2  ;;  %v733_v62 = vpop.f32.mrf.mxu3  ;;  %v771_v4 = vmul.f32 %v753_v12, %v702_v31 }
 0xc35   :  { %v1206_v57 = vpop.eup %1205 }
 0xc36   :  { %v750_v30 = vmul.f32 %v1206_v57, %v1314_v13 }
 0xc38   :  { %v752_v58 = vadd.f32 %v750_v30, %v1317_v16  ;;  %v332_v30 = vadd.f32 %v1553_v34, %v1469_v26 }
 0xc3a   :  { %756 = vrot.lane.b32.xlu0 %v752_v58, %s1238_s2  ;;  %v754_v23 = vmul.f32 %v752_v58, %v685_v35 }
 0xca6   :  { %v774_v28 = vpop.permute.xlu1 %773 }
 0xca7   :  { %v776_v60 = vmul.f32 %v774_v28, %v753_v12 }
 0xca9   :  { %778 = vrot.lane.b32.xlu0 %v776_v60, %s1238_s2  ;;  %v319_v60 = vadd.f32 %v1551_v33, %v1307_v8 }
 0xcac   :  { %v757_v0 = vpop.permute.xlu0 %756 }
 0xcad   :  { %v759_v1 = vmul.f32 %v757_v0, %v752_v58 }
 0xcaf   :  { %761 = vrot.lane.b32.xlu2 %v759_v1, %s1238_s2 }
 0xd09   :  { %v762_v2 = vpop.permute.xlu2 %761 }
 0xd0a   :  { %v764_v3 = vadd.f32 %v762_v2, %v754_v23 }
 0xd0c   :  { %1207 = vtanh.f32 %v764_v3 }
 0xd12   :  { %v1208_v5 = vpop.eup %1207 }
 0xd13   :  { %767 = vrot.lane.b32.xlu1 %v1208_v5, %s1238_s2 }
 0xd1b   :  { %v779_v29 = vpop.permute.xlu0 %778 }
 0xd1c   :  { %v781_v7 = vadd.f32 %v779_v29, %v771_v4 }
 0xd1e   :  { %1209 = vtanh.f32 %v781_v7 }
 0xd24   :  { %v1210_v10 = vpop.eup %1209 }
 0xd25   :  { %784 = vrot.lane.b32.xlu2 %v1210_v10, %s1238_s2 }
 0xd7f   :  { %v785_v15 = vpop.permute.xlu2 %784 }
 0xd80   :  { %v787_v55 = vmul.f32 %v785_v15, %v753_v12 }
 0xd82   :  { %793 = vrot.lane.b32.xlu1 %v787_v55, %s1240_s10 }
 0xd85   :  { %v768_v42 = vpop.permute.xlu1 %767 }
 0xd86   :  { %v770_v48 = vmul.f32 %v768_v42, %v752_v58 }
 0xd88   :  { %789 = vrot.lane.b32.xlu0 %v770_v48, %s1239_s23 }
 0xdf4   :  { %v794_v56 = vpop.permute.xlu1 %793 }
 0xdfa   :  { %v790_v61 = vpop.permute.xlu0 %789 }
 0xdfb   :  { %v796_v14 = vsel %vm359_vm3, %v790_v61, %v794_v56 }
 0xdfc   :  { %v797_v17 = vpack.c.bf16 %v796_v14, %v796_v14 }
 0xdfe   :  { %1135 = vmatmul.msk.bf16.vlgmr.msra.gmra.mxu1 %vm402_vm4, %v797_v17  ;;  %1136 = vmatmul.msk.bf16.vlgmr.msra.gmra.mxu2 %vm402_vm4, %v797_v17 }
 0xe7b   :  { %v810_v18 = vpop.f32.mrf.mxu1 }
 0xe7c   :  { %v811_v19 = vadd.f32 %v810_v18, %v287_v11 }
 0xe7e   :  { %1211 = vtanh.f32 %v811_v19 }
 0xe81   :  { %v823_v59 = vpop.f32.mrf.mxu2 }
 0xe82   :  { %v824_v27 = vadd.f32 %v823_v59, %v300_v25 }
 0xe83   :  { %v812_v31 = vpop.f32.mrf.mxu1 }
 0xe84   :  { %v1212_v36 = vpop.eup %1211  ;;  %1213 = vtanh.f32 %v824_v27 }
 0xe85   :  { %v829_v41 = vmul.f32 %v1212_v36, %v1314_v13 }
 0xe87   :  { %v831_v32 = vadd.f32 %v829_v41, %v1317_v16 }
 0xe89   :  { %v825_v35 = vpop.f32.mrf.mxu2  ;;  %835 = vrot.lane.b32.xlu2 %v831_v32, %s1238_s2  ;;  %v833_v24 = vmul.f32 %v831_v32, %v764_v3 }
 0xe8a   :  { %v1214_v37 = vpop.eup %1213 }
 0xe8b   :  { %v830_v21 = vmul.f32 %v1214_v37, %v1477_v43 }
 0xe8d   :  { %v832_v47 = vadd.f32 %v830_v21, %v1482_v44 }
 0xe8f   :  { %852 = vrot.lane.b32.xlu0 %v832_v47, %s1238_s2  ;;  %v850_v40 = vmul.f32 %v832_v47, %v781_v7 }
 0xee3   :  { %v836_v20 = vpop.permute.xlu2 %835 }
 0xee4   :  { %v838_v54 = vmul.f32 %v836_v20, %v831_v32 }
 0xee6   :  { %840 = vrot.lane.b32.xlu1 %v838_v54, %s1238_s2 }
 0xf01   :  { %v853_v38 = vpop.permute.xlu0 %852 }
 0xf02   :  { %v855_v39 = vmul.f32 %v853_v38, %v832_v47 }
 0xf04   :  { %857 = vrot.lane.b32.xlu2 %v855_v39, %s1238_s2 }
 0xf58   :  { %v841_v6 = vpop.permute.xlu1 %840 }
 0xf59   :  { %v843_v22 = vadd.f32 %v841_v6, %v833_v24 }
 0xf5b   :  { %1215 = vtanh.f32 %v843_v22 }
 0xf5e   :  { %v858_v9 = vpop.permute.xlu2 %857 }
 0xf5f   :  { %v860_v45 = vadd.f32 %v858_v9, %v850_v40  ;;  %v13_v9 = vstv %s1716_s7 }
 0xf60   :  { %14 = vst [vmem:[#allocation2] sm:$0x1] %v13_v9 }
 0xf61   :  { %v1216_v46 = vpop.eup %1215  ;;  %1217 = vtanh.f32 %v860_v45 }
 0xf62   :  { %846 = vrot.lane.b32.xlu0 %v1216_v46, %s1238_s2 }
 0xf67   :  { %v1218_v49 = vpop.eup %1217 }
 0xf68   :  { %863 = vrot.lane.b32.xlu1 %v1218_v49, %s1238_s2 }
 0xfd4   :  { %v847_v50 = vpop.permute.xlu0 %846 }
 0xfd5   :  { %v849_v51 = vmul.f32 %v847_v50, %v831_v32  ;;  %v1165_v50 = vld [vmem:[%s1715_s6] ss:$0 sm:$0xff] }
 0xfd7   :  { %868 = vrot.lane.b32.xlu2 %v849_v51, %s1239_s23 }
 0xfda   :  { %v864_v52 = vpop.permute.xlu1 %863 }
 0xfdb   :  { %v866_v53 = vmul.f32 %v864_v52, %v832_v47 }
 0xfdd   :  { %872 = vrot.lane.b32.xlu0 %v866_v53, %s1240_s10 }
0x1031   :  { %v869_v63 = vpop.permute.xlu2 %868 }
0x104f   :  { %v873_v12 = vpop.permute.xlu0 %872 }
0x1050   :  { %v875_v62 = vsel %vm359_vm3, %v869_v63, %v873_v12  ;;  %v1166_v12 = vld [vmem:[#allocation2] ss:$0 sm:$0xff] }
0x1051   :  { %v876_v57 = vpack.c.bf16 %v875_v62, %v875_v62 }
0x1053   :  { %1137 = vmatmul.msk.bf16.vlgmr.msra.gmra.mxu3 %vm402_vm4, %v876_v57  ;;  %1138 = vmatmul.msk.bf16.vlgmr.msrb.gmra.mxu0 %vm402_vm4, %v876_v57 }
0x10d0   :  { %v902_v58 = vpop.f32.mrf.mxu0 }
0x10d1   :  { %v903_v28 = vadd.f32 %v902_v58, %v332_v30 }
0x10d3   :  { %1219 = vtanh.f32 %v903_v28 }
0x10d6   :  { %v889_v0 = vpop.f32.mrf.mxu3 }
0x10d7   :  { %v890_v1 = vadd.f32 %v889_v0, %v319_v60 }
0x10d8   :  { %v904_v23 = vpop.f32.mrf.mxu0 }
0x10d9   :  { %v1220_v2 = vpop.eup %1219  ;;  %1221 = vtanh.f32 %v890_v1 }
0x10da   :  { %v909_v3 = vmul.f32 %v1220_v2, %v1477_v43 }
0x10dc   :  { %v911_v5 = vadd.f32 %v909_v3, %v1482_v44 }
0x10de   :  { %931 = vrot.lane.b32.xlu2 %v911_v5, %s1238_s2  ;;  %v891_v4 = vpop.f32.mrf.mxu3  ;;  %v929_v55 = vmul.f32 %v911_v5, %v860_v45  ;;  %v1164_v45 = vld [vmem:[%s1714_s5] ss:$0 sm:$0xff] }
0x10df   :  { %v1222_v29 = vpop.eup %1221 }
0x10e0   :  { %v908_v34 = vmul.f32 %v1222_v29, %v1314_v13 }
0x10e2   :  { %v910_v7 = vadd.f32 %v908_v34, %v1317_v16 }
0x10e4   :  { %914 = vrot.lane.b32.xlu1 %v910_v7, %s1238_s2  ;;  %v912_v13 = vmul.f32 %v910_v7, %v843_v22 }
0x1138   :  { %v932_v8 = vpop.permute.xlu2 %931 }
0x1139   :  { %v934_v33 = vmul.f32 %v932_v8, %v911_v5 }
0x113b   :  { %936 = vrot.lane.b32.xlu1 %v934_v33, %s1238_s2 }
0x1156   :  { %v915_v10 = vpop.permute.xlu1 %914 }
0x1157   :  { %v917_v15 = vmul.f32 %v915_v10, %v910_v7 }
0x1159   :  { %919 = vrot.lane.b32.xlu0 %v917_v15, %s1238_s2 }
0x11ad   :  { %v937_v42 = vpop.permute.xlu1 %936 }
0x11ae   :  { %v939_v48 = vadd.f32 %v937_v42, %v929_v55 }
0x11b0   :  { %1223 = vtanh.f32 %v939_v48 }
0x11b6   :  { %v1224_v56 = vpop.eup %1223 }
0x11b7   :  { %942 = vrot.lane.b32.xlu0 %v1224_v56, %s1238_s2 }
0x11cb   :  { %v920_v61 = vpop.permute.xlu0 %919 }
0x11cc   :  { %v922_v16 = vadd.f32 %v920_v61, %v912_v13 }
0x11ce   :  { %1225 = vtanh.f32 %v922_v16 }
0x11d4   :  { %v1226_v14 = vpop.eup %1225 }
0x11d5   :  { %925 = vrot.lane.b32.xlu2 %v1226_v14, %s1238_s2 }
0x1229   :  { %v943_v17 = vpop.permute.xlu0 %942 }
0x122a   :  { %v945_v11 = vmul.f32 %v943_v17, %v911_v5 }
0x122c   :  { %951 = vrot.lane.b32.xlu2 %v945_v11, %s1240_s10 }
0x122f   :  { %v926_v18 = vpop.permute.xlu2 %925 }
0x1230   :  { %v928_v19 = vmul.f32 %v926_v18, %v910_v7 }
0x1232   :  { %947 = vrot.lane.b32.xlu1 %v928_v19, %s1239_s23 }
0x1286   :  { %v952_v25 = vpop.permute.xlu2 %951 }
0x12a4   :  { %v948_v59 = vpop.permute.xlu1 %947 }
0x12a5   :  { %v954_v27 = vsel %vm359_vm3, %v948_v59, %v952_v25 }
0x12a6   :  { %v955_v31 = vpack.c.bf16 %v954_v27, %v954_v27 }
0x12a8   :  { %1139 = vmatmul.msk.bf16.vlgmr.msrb.gmra.mxu1 %vm402_vm4, %v955_v31 }
0x1325   :  { %v968_v36 = vpop.f32.mrf.mxu1 }
0x1326   :  { %v969_v41 = vadd.f32 %v968_v36, %v1469_v26  ;;  %v1159_v26 = vld [vmem:[%s1713_s4 + $0x8] sm:$0xff] }
0x1327   :  { %1025 = vmatpush.bf16.msrb.mxu2 %v1159_v26 }
0x1328   :  { %1227 = vtanh.f32 %v969_v41 }
0x132d   :  { %v970_v32 = vpop.f32.mrf.mxu1 }
0x132e   :  { %v1228_v35 = vpop.eup %1227 }
0x132f   :  { %v973_v37 = vmul.f32 %v1228_v35, %v1477_v43  ;;  %v1158_v43 = vld [vmem:[%s1713_s4] sm:$0xff] }
0x1330   :  { %1026 = vmatpush.bf16.msrb.mxu2 %v1158_v43 }
0x1331   :  { %v974_v21 = vadd.f32 %v973_v37, %v1482_v44 }
0x1333   :  { %977 = vrot.lane.b32.xlu0 %v974_v21, %s1238_s2  ;;  %v975_v54 = vmul.f32 %v974_v21, %v939_v48 }
0x13a5   :  { %v978_v47 = vpop.permute.xlu0 %977 }
0x13a6   :  { %v980_v20 = vmul.f32 %v978_v47, %v974_v21 }
0x13a8   :  { %982 = vrot.lane.b32.xlu1 %v980_v20, %s1238_s2 }
0x141a   :  { %v983_v38 = vpop.permute.xlu1 %982 }
0x141b   :  { %v985_v39 = vadd.f32 %v983_v38, %v975_v54 }
0x141d   :  { %1229 = vtanh.f32 %v985_v39 }
0x1423   :  { %v1230_v24 = vpop.eup %1229 }
0x1424   :  { %988 = vrot.lane.b32.xlu2 %v1230_v24, %s1238_s2 }
0x147e   :  { %v989_v44 = vpop.permute.xlu2 %988 }
0x147f   :  { %v991_v6 = vmul.f32 %v989_v44, %v974_v21 }
0x1481   :  { %v992_v22 = vpack.c.bf16 %v991_v6, %v991_v6 }
0x1483   :  { %1002 = vrot.lane.b32.xlu0 %v992_v22, %s1239_s23 }
0x14f5   :  { %v1003_v40 = vpop.permute.xlu0 %1002 }
0x14f6   :  { %1148 = vmatmul.msk.bf16.vlgmr.msrb.gmra.mxu2 %vm359_vm3, %v1003_v40 }
0x1579   :  { %v1028_v46 = vpop.f32.mrf.mxu2 }
0x157a   :  { %v1029_v49 = vadd.f32 %v1164_v45, %v1028_v46 }
0x157c   :  { %1231 = vtanh.f32 %v1029_v49 }
0x1581   :  { %v1030_v51 = vpop.f32.mrf.mxu2 }
0x1582   :  { %v1232_v52 = vpop.eup %1231 }
0x1583   :  { %v1037_v53 = vmul.f32 %v1232_v52, %v1165_v50 }
0x1585   :  { %v1038_v63 = vsel %vm359_vm3, %v1037_v53, 0.0 }
0x1586   :  { %1039 = vadd.xlane.f32.xlu1 %v1038_v63 }
0x15f9   :  { %v1040_v62 = vpop.xlane.xlu1 %1039 }
0x15fa   :  { %v1045_v57 = vadd.f32 %v1166_v12, %v1040_v62 }
0x15fc   :  { %v1149_v30 = vmul.f32 -1.442695, %v1045_v57 }
0x15fe   :  { %1233 = vpow2.f32 %v1149_v30 }
0x1604   :  { %v1234_v58 = vpop.eup %1233 }
0x1605   :  { %v1049_v28 = vadd.f32 1.0, %v1234_v58 }
0x1607   :  { %1235 = vrcp.f32 %v1049_v28  ;;  %v1061_v23 = vand.u32 2147483648, %v1049_v28  ;;  %v1059_v3 = vand.u32 2147483647, %v1049_v28  ;;  %vm1055_vm7 = vweird.f32 %v1049_v28 }
0x1609   :  { %v1062_v4 = vor.u32 1.1754944e-38, %v1061_v23  ;;  %vm1060_vm10 = vcmp.eq.f32.partialorder %v1059_v3, 8.507059e+37 }
0x160d   :  { %v1236_v60 = vpop.eup %1235 }
0x160e   :  { %v1051_v0 = vmul.f32 %v1236_v60, %v1049_v28  ;;  %vm1056_vm6 = vweird.f32 %v1236_v60 }
0x160f   :  { %vm1057_vm9 = vmor %vm1055_vm7, %vm1056_vm6 }
0x1610   :  { %v1052_v1 = vsub.f32 1.0, %v1051_v0 }
0x1612   :  { %v1053_v2 = vmul.f32 %v1236_v60, %v1052_v1 }
0x1614   :  { %v1054_v5 = vadd.f32 %v1236_v60, %v1053_v2 }
0x1616   :  { %v1058_v29 = vsel %vm1057_vm9, %v1236_v60, %v1054_v5 }
0x1617   :  { %v1063_v34 = vsel %vm1060_vm10, %v1062_v4, %v1058_v29 }
0x1618   :  { %1066 = vst.msk [vmem:[%s1717_s8] sm:$0xff] %vm1065_vm8, %v1063_v34 }

</bundles_post_ra>
